<compile_context>
chip_gen: v7x
topology: tpu7x:2x2x1
jax: 0.10.0
libtpu: 0.0.40
codegen_flags: <defaults>
</compile_context>

<pallas_src>
import functools
import math

import jax
import jax.numpy as jnp
from jax.experimental import pallas as pl
from jax.experimental.pallas import tpu as pltpu

LN_EPS = 1e-5  # torch nn.LayerNorm default


# ---------------------------------------------------------------------------
# Kernel-side helpers
# ---------------------------------------------------------------------------
def _layer_norm(v, gamma, beta):
    # always f32 statistics (v5e has no bf16 VPU); gamma/beta broadcast from (1, E)
    mu = jnp.mean(v, axis=-1, keepdims=True)
    var = jnp.mean(jnp.square(v - mu), axis=-1, keepdims=True)
    return (v - mu) * jax.lax.rsqrt(var + LN_EPS) * gamma + beta


# ---------------------------------------------------------------------------
# Fused whole-model Pallas kernel (all blocks + final LN + lm head, grid=())
# ---------------------------------------------------------------------------
def fused_forward_kernel(
    x_ref, mask_ref,
    ln1_g, ln1_b, wqkv_ref, wo_ref, bo_ref,
    ln2_g, ln2_b, w1_ref, b1_ref, w2_ref, b2_ref,
    lnf_g, lnf_b, wout_ref, bout_ref,
    o_ref,
    *, n_blocks, n_heads, head_size, mm_dtype,
):
    x3 = x_ref[...]                                   # (B, T, E) f32
    b, t, e = x3.shape
    d = n_heads * head_size
    bt = b * t
    scale = 1.0 / math.sqrt(head_size)

    # additive causal mask, computed once wrapper-side, reused by every block
    mask = mask_ref[...][None, :, :]                  # (1, T, T) 0 / -1e30

    # weights loaded into vregs once; reused by every block (shared-weight Sequential)
    wqkv = wqkv_ref[...].astype(mm_dtype)             # (E, 3*NH*HS)
    wo = wo_ref[...].astype(mm_dtype)                 # (NH*HS, E)
    bo = bo_ref[...]
    w1 = w1_ref[...].astype(mm_dtype)
    b1 = b1_ref[...]
    w2 = w2_ref[...].astype(mm_dtype)
    b2 = b2_ref[...]
    g1, be1 = ln1_g[...], ln1_b[...]
    g2, be2 = ln2_g[...], ln2_b[...]

    def mm(a, w):                                     # 2-D slab matmul, f32 accumulate
        return jnp.dot(a.astype(mm_dtype), w, preferred_element_type=jnp.float32)

    # flatten (B, T, E) -> (B*T, E): larger M for the MXU, full-sublane vregs
    x = x3.reshape(bt, e)

    for _ in range(n_blocks):                         # static unroll; same weights each block
        # --- multi-head causal self-attention on LayerNorm1(x) ---
        h = _layer_norm(x, g1, be1)                   # (BT, E) f32
        qkv = mm(h, wqkv)                             # (BT, 3*NH*HS) f32 -- one fused matmul

        head_outs = []
        for hh in range(n_heads):                     # heads split only for scores / PV
            lo = hh * head_size
            qh = qkv[:, lo:lo + head_size].reshape(b, t, head_size)
            kh = qkv[:, d + lo:d + lo + head_size].reshape(b, t, head_size)
            vh = qkv[:, 2 * d + lo:2 * d + lo + head_size].reshape(b, t, head_size)

            s = jnp.einsum("btd,bsd->bts", qh.astype(mm_dtype), kh.astype(mm_dtype),
                           preferred_element_type=jnp.float32) * scale
            s = s + mask                              # additive mask: single vadd
            s = s - jnp.max(s, axis=-1, keepdims=True)
            p = jnp.exp(s)
            p = p * pl.reciprocal(jnp.sum(p, axis=-1, keepdims=True), approx=True)
            oh = jnp.einsum("bts,bsd->btd", p.astype(mm_dtype), vh.astype(mm_dtype),
                            preferred_element_type=jnp.float32)
            head_outs.append(oh)

        # concat heads along lanes, then ONE fused output projection
        o_heads = jnp.concatenate(head_outs, axis=-1).reshape(bt, d)
        x = x + mm(o_heads, wo) + bo

        # --- feedforward on LayerNorm2(x) ---
        h2 = _layer_norm(x, g2, be2)
        h2 = jnp.maximum(mm(h2, w1) + b1, 0.0)
        x = x + mm(h2, w2) + b2

    # --- final LayerNorm + lm head (fused into the same kernel) ---
    hf = _layer_norm(x, lnf_g[...], lnf_b[...])
    logits = mm(hf, wout_ref[...].astype(mm_dtype)) + bout_ref[...]
    o_ref[...] = logits.reshape(b, t, -1).astype(o_ref.dtype)


# ---------------------------------------------------------------------------
# Wrapper: weight fusion + mask prep + single pallas_call
# ---------------------------------------------------------------------------
def _cost_estimate(cfg, b, t, args, out_shape):
    E, H, V = cfg["embed_size"], cfg["hidden_size"], cfg["vocab_size"]
    NH, HS, NB = cfg["n_heads"], cfg["head_size"], cfg["n_blocks"]
    D = NH * HS
    bt = b * t
    per_block = (2 * bt * E * 3 * D            # fused QKV projection
                 + 2 * NH * b * t * t * HS     # scores
                 + 2 * NH * b * t * t * HS     # PV
                 + 2 * bt * D * E              # fused output projection
                 + 2 * bt * E * H + 2 * bt * H * E)   # FFN
    flops = NB * per_block + 2 * bt * E * V
    transcendentals = NB * (NH * b * t * t + NH * b * t) + (2 * NB + 1) * bt
    bytes_accessed = sum(int(a.size) * a.dtype.itemsize for a in args)
    bytes_accessed += int(out_shape.size) * jnp.dtype(out_shape.dtype).itemsize
    return pl.CostEstimate(flops=int(flops), transcendentals=int(transcendentals),
                           bytes_accessed=int(bytes_accessed))


def fused_lm_forward(x, params, cfg, mm_dtype=jnp.float32):
    """x: (B, T, E) f32 embedded tokens (+ positional encoding)."""
    b, t, e = x.shape
    bp = params["block"]
    NH, HS = cfg["n_heads"], cfg["head_size"]

    # fuse per-head projection weights (wrapper-side, cheap, head-major columns)
    def heads_to_cols(w):                      # (NH, E, HS) -> (E, NH*HS)
        return jnp.transpose(w, (1, 0, 2)).reshape(e, NH * HS)

    wqkv = jnp.concatenate([heads_to_cols(bp["wq"]), heads_to_cols(bp["wk"]),
                            heads_to_cols(bp["wv"])], axis=-1)        # (E, 3*NH*HS)
    wo = bp["wo"].reshape(NH * HS, e)                                 # (NH*HS, E)

    # additive causal mask: 0 on/below diagonal, -1e30 above
    mask = jnp.where(jnp.tril(jnp.ones((t, t), bool)), 0.0, -1e30).astype(jnp.float32)

    args = (x, mask,
            bp["ln1_g"], bp["ln1_b"], wqkv, wo, bp["bo"],
            bp["ln2_g"], bp["ln2_b"], bp["w1"], bp["b1"], bp["w2"], bp["b2"],
            params["lnf_g"], params["lnf_b"], params["w_out"], params["b_out"])

    out_shape = jax.ShapeDtypeStruct((b, t, cfg["vocab_size"]), jnp.float32)
    ce = _cost_estimate(cfg, b, t, args, out_shape)

    # TODO(synk): for production-scale T/E/vocab, switch to BlockSpec tiling over (B*T)
    # and vocab (lane-dense 128-multiples, "parallel" grid axes for the v7x 2-TC split);
    # at these tiny shapes everything is whole-array VMEM-resident in one call.
    return pl.pallas_call(
        functools.partial(fused_forward_kernel, n_blocks=cfg["n_blocks"],
                          n_heads=NH, head_size=HS, mm_dtype=mm_dtype),
        out_shape=out_shape,
        in_specs=[pl.BlockSpec(memory_space=pltpu.MemorySpace.VMEM)] * len(args),
        out_specs=pl.BlockSpec(memory_space=pltpu.MemorySpace.VMEM),
        compiler_params=pltpu.CompilerParams(vmem_limit_bytes=32 * 1024 * 1024),
        cost_estimate=ce,
    )(*args)


# ---------------------------------------------------------------------------
# Model glue (embedding gather + positional encoding stay in plain JAX)
# ---------------------------------------------------------------------------
def sin_cos_position_encoding(context_size, embed_size):
    pos = jnp.arange(context_size, dtype=jnp.float32)[:, None]
    i = jnp.arange(0, embed_size, 2, dtype=jnp.float32)[None, :]
    div = jnp.exp(-math.log(10000.0) * i / embed_size)
    pe = jnp.zeros((context_size, embed_size), jnp.float32)
    pe = pe.at[:, 0::2].set(jnp.sin(pos * div))
    pe = pe.at[:, 1::2].set(jnp.cos(pos * div))
    return pe


def init_params(key, cfg):
    E, H = cfg["embed_size"], cfg["hidden_size"]
    V, NH, HS = cfg["vocab_size"], cfg["n_heads"], cfg["head_size"]
    ks = jax.random.split(key, 8)

    def w(k, shape, scale=0.02):
        return scale * jax.random.normal(k, shape, jnp.float32)

    block = dict(
        ln1_g=jnp.ones((1, E), jnp.float32), ln1_b=jnp.zeros((1, E), jnp.float32),
        wq=w(ks[0], (NH, E, HS)), wk=w(ks[1], (NH, E, HS)), wv=w(ks[2], (NH, E, HS)),
        wo=w(ks[3], (NH, HS, E)), bo=jnp.zeros((1, E), jnp.float32),
        ln2_g=jnp.ones((1, E), jnp.float32), ln2_b=jnp.zeros((1, E), jnp.float32),
        w1=w(ks[4], (E, H)), b1=jnp.zeros((1, H), jnp.float32),
        w2=w(ks[5], (H, E)), b2=jnp.zeros((1, E), jnp.float32),
    )
    return dict(
        tok_emb=w(ks[6], (V, E), 1.0),
        pos_emb=sin_cos_position_encoding(cfg["context_size"], E),
        block=block,
        lnf_g=jnp.ones((1, E), jnp.float32), lnf_b=jnp.zeros((1, E), jnp.float32),
        w_out=w(ks[7], (E, V)), b_out=jnp.zeros((1, V), jnp.float32),
    )


def forward(tokens, params, cfg, mm_dtype=jnp.float32):
    _, t = tokens.shape
    x = params["tok_emb"][tokens]               # (B, T, E) embedding gather (glue)
    x = x + params["pos_emb"][:t]
    # ONE fused Pallas kernel: n_blocks (shared weights) + final LN + lm head.
    # Use mm_dtype=jnp.bfloat16 on v6e/v7x for MXU throughput (f32 accumulation kept).
    return fused_lm_forward(x, params, cfg, mm_dtype=mm_dtype)


# ---------------------------------------------------------------------------
# Pure-JAX reference (same math) for a correctness check
# ---------------------------------------------------------------------------
def reference_forward(tokens, params, cfg):
    hp = jax.lax.Precision.HIGHEST
    bp = params["block"]
    _, t = tokens.shape
    x = params["tok_emb"][tokens] + params["pos_emb"][:t]
    mask = jnp.tril(jnp.ones((t, t), bool))[None]
    scale = 1.0 / math.sqrt(cfg["head_size"])

    def ln(v, g, b):
        mu = v.mean(-1, keepdims=True)
        var = ((v - mu) ** 2).mean(-1, keepdims=True)
        return (v - mu) / jnp.sqrt(var + LN_EPS) * g + b

    for _ in range(cfg["n_blocks"]):
        h = ln(x, bp["ln1_g"], bp["ln1_b"])
        attn = jnp.zeros_like(x)
        for hh in range(cfg["n_heads"]):
            qh = jnp.einsum("bte,ed->btd", h, bp["wq"][hh], precision=hp)
            kh = jnp.einsum("bte,ed->btd", h, bp["wk"][hh], precision=hp)
            vh = jnp.einsum("bte,ed->btd", h, bp["wv"][hh], precision=hp)
            s = jnp.einsum("btd,bsd->bts", qh, kh, precision=hp) * scale
            s = jnp.where(mask, s, -1e30)
            p = jax.nn.softmax(s, axis=-1)
            oh = jnp.einsum("bts,bsd->btd", p, vh, precision=hp)
            attn = attn + jnp.einsum("btd,de->bte", oh, bp["wo"][hh], precision=hp)
        x = x + attn + bp["bo"]
        h2 = ln(x, bp["ln2_g"], bp["ln2_b"])
        h2 = jnp.maximum(jnp.einsum("bte,eh->bth", h2, bp["w1"], precision=hp) + bp["b1"], 0.0)
        x = x + jnp.einsum("bth,he->bte", h2, bp["w2"], precision=hp) + bp["b2"]
    h = ln(x, params["lnf_g"], params["lnf_b"])
    return jnp.einsum("bte,ev->btv", h, params["w_out"], precision=hp) + params["b_out"]


# ---------------------------------------------------------------------------
if __name__ == "__main__":
    cfg = dict(context_size=8, vocab_size=32, embed_size=32, head_size=8,
               hidden_size=64, n_heads=4, n_blocks=2, dropout=0.0)

    key = jax.random.PRNGKey(0)
    params = init_params(key, cfg)
    tokens = jax.random.randint(jax.random.fold_in(key, 123),
                                (2, cfg["context_size"]), 0, cfg["vocab_size"],
                                dtype=jnp.int32)

    logits = forward(tokens, params, cfg)
    logits = jax.block_until_ready(logits)

    assert logits.shape == (2, cfg["context_size"], cfg["vocab_size"])
    ref = reference_forward(tokens, params, cfg)
    assert bool(jnp.isfinite(logits).all())
    assert bool(jnp.allclose(logits, ref, atol=2e-3, rtol=2e-3)), "mismatch vs reference"

    print("KERNEL_OK")
</pallas_src>

<mosaic_0001>
module attributes {stable_mosaic.version = 11 : i64} {
  func.func @fused_forward_kernel(%arg0: memref<2x8x32xf32, #tpu.memory_space<vmem>>, %arg1: memref<8x8xf32, #tpu.memory_space<vmem>>, %arg2: memref<1x32xf32, #tpu.memory_space<vmem>>, %arg3: memref<1x32xf32, #tpu.memory_space<vmem>>, %arg4: memref<32x96xf32, #tpu.memory_space<vmem>>, %arg5: memref<32x32xf32, #tpu.memory_space<vmem>>, %arg6: memref<1x32xf32, #tpu.memory_space<vmem>>, %arg7: memref<1x32xf32, #tpu.memory_space<vmem>>, %arg8: memref<1x32xf32, #tpu.memory_space<vmem>>, %arg9: memref<32x64xf32, #tpu.memory_space<vmem>>, %arg10: memref<1x64xf32, #tpu.memory_space<vmem>>, %arg11: memref<64x32xf32, #tpu.memory_space<vmem>>, %arg12: memref<1x32xf32, #tpu.memory_space<vmem>>, %arg13: memref<1x32xf32, #tpu.memory_space<vmem>>, %arg14: memref<1x32xf32, #tpu.memory_space<vmem>>, %arg15: memref<32x32xf32, #tpu.memory_space<vmem>>, %arg16: memref<1x32xf32, #tpu.memory_space<vmem>>, %arg17: memref<2x8x32xf32, #tpu.memory_space<vmem>>) attributes {dimension_semantics = [], scalar_prefetch = 0 : i64, scratch_operands = 0 : i64, tpu.core_type = #tpu.core_type<tc>} {
    %c0 = arith.constant 0 : index
    %c0_0 = arith.constant 0 : index
    %c0_1 = arith.constant 0 : index
    %0 = vector.load %arg0[%c0, %c0_0, %c0_1] : memref<2x8x32xf32, #tpu.memory_space<vmem>>, vector<2x8x32xf32>
    %c0_2 = arith.constant 0 : index
    %c0_3 = arith.constant 0 : index
    %1 = vector.load %arg1[%c0_2, %c0_3] : memref<8x8xf32, #tpu.memory_space<vmem>>, vector<8x8xf32>
    %2 = vector.shape_cast %1 : vector<8x8xf32> to vector<1x8x8xf32>
    %c0_4 = arith.constant 0 : index
    %c0_5 = arith.constant 0 : index
    %3 = vector.load %arg4[%c0_4, %c0_5] : memref<32x96xf32, #tpu.memory_space<vmem>>, vector<32x96xf32>
    %c0_6 = arith.constant 0 : index
    %c0_7 = arith.constant 0 : index
    %4 = vector.load %arg5[%c0_6, %c0_7] : memref<32x32xf32, #tpu.memory_space<vmem>>, vector<32x32xf32>
    %c0_8 = arith.constant 0 : index
    %c0_9 = arith.constant 0 : index
    %5 = vector.load %arg6[%c0_8, %c0_9] : memref<1x32xf32, #tpu.memory_space<vmem>>, vector<1x32xf32>
    %c0_10 = arith.constant 0 : index
    %c0_11 = arith.constant 0 : index
    %6 = vector.load %arg9[%c0_10, %c0_11] : memref<32x64xf32, #tpu.memory_space<vmem>>, vector<32x64xf32>
    %c0_12 = arith.constant 0 : index
    %c0_13 = arith.constant 0 : index
    %7 = vector.load %arg10[%c0_12, %c0_13] : memref<1x64xf32, #tpu.memory_space<vmem>>, vector<1x64xf32>
    %c0_14 = arith.constant 0 : index
    %c0_15 = arith.constant 0 : index
    %8 = vector.load %arg11[%c0_14, %c0_15] : memref<64x32xf32, #tpu.memory_space<vmem>>, vector<64x32xf32>
    %c0_16 = arith.constant 0 : index
    %c0_17 = arith.constant 0 : index
    %9 = vector.load %arg12[%c0_16, %c0_17] : memref<1x32xf32, #tpu.memory_space<vmem>>, vector<1x32xf32>
    %c0_18 = arith.constant 0 : index
    %c0_19 = arith.constant 0 : index
    %10 = vector.load %arg2[%c0_18, %c0_19] : memref<1x32xf32, #tpu.memory_space<vmem>>, vector<1x32xf32>
    %c0_20 = arith.constant 0 : index
    %c0_21 = arith.constant 0 : index
    %11 = vector.load %arg3[%c0_20, %c0_21] : memref<1x32xf32, #tpu.memory_space<vmem>>, vector<1x32xf32>
    %c0_22 = arith.constant 0 : index
    %c0_23 = arith.constant 0 : index
    %12 = vector.load %arg7[%c0_22, %c0_23] : memref<1x32xf32, #tpu.memory_space<vmem>>, vector<1x32xf32>
    %c0_24 = arith.constant 0 : index
    %c0_25 = arith.constant 0 : index
    %13 = vector.load %arg8[%c0_24, %c0_25] : memref<1x32xf32, #tpu.memory_space<vmem>>, vector<1x32xf32>
    %14 = vector.shape_cast %0 : vector<2x8x32xf32> to vector<16x32xf32>
    %cst = arith.constant dense<0.000000e+00> : vector<16xf32>
    %15 = vector.multi_reduction <add>, %14, %cst [1] : vector<16x32xf32> to vector<16xf32>
    %16 = vector.shape_cast %15 : vector<16xf32> to vector<16x1xf32>
    %cst_26 = arith.constant 3.200000e+01 : f32
    %17 = vector.broadcast %cst_26 : f32 to vector<16x1xf32>
    %18 = arith.divf %16, %17 : vector<16x1xf32>
    %19 = vector.broadcast %18 : vector<16x1xf32> to vector<16x32xf32>
    %20 = arith.subf %14, %19 : vector<16x32xf32>
    %21 = arith.mulf %20, %20 : vector<16x32xf32>
    %cst_27 = arith.constant dense<0.000000e+00> : vector<16xf32>
    %22 = vector.multi_reduction <add>, %21, %cst_27 [1] : vector<16x32xf32> to vector<16xf32>
    %23 = vector.shape_cast %22 : vector<16xf32> to vector<16x1xf32>
    %cst_28 = arith.constant 3.200000e+01 : f32
    %24 = vector.broadcast %cst_28 : f32 to vector<16x1xf32>
    %25 = arith.divf %23, %24 : vector<16x1xf32>
    %26 = vector.broadcast %18 : vector<16x1xf32> to vector<16x32xf32>
    %27 = arith.subf %14, %26 : vector<16x32xf32>
    %cst_29 = arith.constant 9.99999974E-6 : f32
    %28 = vector.broadcast %cst_29 : f32 to vector<16x1xf32>
    %29 = arith.addf %25, %28 : vector<16x1xf32>
    %30 = math.rsqrt %29 : vector<16x1xf32>
    %31 = vector.broadcast %30 : vector<16x1xf32> to vector<16x32xf32>
    %32 = arith.mulf %27, %31 : vector<16x32xf32>
    %33 = vector.broadcast %10 : vector<1x32xf32> to vector<16x32xf32>
    %34 = arith.mulf %32, %33 : vector<16x32xf32>
    %35 = vector.broadcast %11 : vector<1x32xf32> to vector<16x32xf32>
    %36 = arith.addf %34, %35 : vector<16x32xf32>
    %cst_30 = arith.constant dense<0.000000e+00> : vector<16x96xf32>
    %37 = tpu.matmul %36, %3, %cst_30 {dimension_numbers = #tpu.dot_dimension_numbers<[1], [0], [0], [1], [0, 0, 1, 1], [], []>} : vector<16x32xf32>, vector<32x96xf32>, vector<16x96xf32> -> vector<16x96xf32>
    %38 = vector.extract_strided_slice %37 {offsets = [0, 0], sizes = [16, 8], strides = [1, 1]} : vector<16x96xf32> to vector<16x8xf32>
    %39 = vector.shape_cast %38 : vector<16x8xf32> to vector<2x8x8xf32>
    %40 = vector.extract_strided_slice %37 {offsets = [0, 32], sizes = [16, 8], strides = [1, 1]} : vector<16x96xf32> to vector<16x8xf32>
    %41 = vector.shape_cast %40 : vector<16x8xf32> to vector<2x8x8xf32>
    %42 = vector.extract_strided_slice %37 {offsets = [0, 64], sizes = [16, 8], strides = [1, 1]} : vector<16x96xf32> to vector<16x8xf32>
    %43 = vector.shape_cast %42 : vector<16x8xf32> to vector<2x8x8xf32>
    "tpu.trace_start"() <{level = 10 : i32, message = "btd,bsd->bts"}> : () -> ()
    %cst_31 = arith.constant dense<0.000000e+00> : vector<2x8x8xf32>
    %44 = tpu.matmul %39, %41, %cst_31 {dimension_numbers = #tpu.dot_dimension_numbers<[2], [2], [1], [1], [0, 0, 0, 1, 1, 1], [0], [0]>} : vector<2x8x8xf32>, vector<2x8x8xf32>, vector<2x8x8xf32> -> vector<2x8x8xf32>
    "tpu.trace_stop"() : () -> ()
    %cst_32 = arith.constant 0.353553385 : f32
    %45 = vector.broadcast %cst_32 : f32 to vector<2x8x8xf32>
    %46 = arith.mulf %44, %45 : vector<2x8x8xf32>
    %47 = vector.broadcast %2 : vector<1x8x8xf32> to vector<2x8x8xf32>
    %48 = arith.addf %46, %47 : vector<2x8x8xf32>
    %cst_33 = arith.constant dense<0xFF800000> : vector<2x8xf32>
    %49 = vector.multi_reduction <maximumf>, %48, %cst_33 [2] : vector<2x8x8xf32> to vector<2x8xf32>
    %50 = vector.shape_cast %49 : vector<2x8xf32> to vector<2x8x1xf32>
    %51 = vector.broadcast %50 : vector<2x8x1xf32> to vector<2x8x8xf32>
    %52 = arith.subf %48, %51 : vector<2x8x8xf32>
    %53 = math.exp %52 : vector<2x8x8xf32>
    %cst_34 = arith.constant dense<0.000000e+00> : vector<2x8xf32>
    %54 = vector.multi_reduction <add>, %53, %cst_34 [2] : vector<2x8x8xf32> to vector<2x8xf32>
    %55 = vector.shape_cast %54 : vector<2x8xf32> to vector<2x8x1xf32>
    %56 = tpu.reciprocal %55 {approx = true} : vector<2x8x1xf32> -> vector<2x8x1xf32>
    %57 = vector.broadcast %56 : vector<2x8x1xf32> to vector<2x8x8xf32>
    %58 = arith.mulf %53, %57 : vector<2x8x8xf32>
    "tpu.trace_start"() <{level = 10 : i32, message = "bts,bsd->btd"}> : () -> ()
    %cst_35 = arith.constant dense<0.000000e+00> : vector<2x8x8xf32>
    %59 = tpu.matmul %58, %43, %cst_35 {dimension_numbers = #tpu.dot_dimension_numbers<[2], [1], [1], [2], [0, 0, 0, 1, 1, 2], [0], [0]>} : vector<2x8x8xf32>, vector<2x8x8xf32>, vector<2x8x8xf32> -> vector<2x8x8xf32>
    "tpu.trace_stop"() : () -> ()
    %60 = vector.extract_strided_slice %37 {offsets = [0, 8], sizes = [16, 8], strides = [1, 1]} : vector<16x96xf32> to vector<16x8xf32>
    %61 = vector.shape_cast %60 : vector<16x8xf32> to vector<2x8x8xf32>
    %62 = vector.extract_strided_slice %37 {offsets = [0, 40], sizes = [16, 8], strides = [1, 1]} : vector<16x96xf32> to vector<16x8xf32>
    %63 = vector.shape_cast %62 : vector<16x8xf32> to vector<2x8x8xf32>
    %64 = vector.extract_strided_slice %37 {offsets = [0, 72], sizes = [16, 8], strides = [1, 1]} : vector<16x96xf32> to vector<16x8xf32>
    %65 = vector.shape_cast %64 : vector<16x8xf32> to vector<2x8x8xf32>
    "tpu.trace_start"() <{level = 10 : i32, message = "btd,bsd->bts"}> : () -> ()
    %cst_36 = arith.constant dense<0.000000e+00> : vector<2x8x8xf32>
    %66 = tpu.matmul %61, %63, %cst_36 {dimension_numbers = #tpu.dot_dimension_numbers<[2], [2], [1], [1], [0, 0, 0, 1, 1, 1], [0], [0]>} : vector<2x8x8xf32>, vector<2x8x8xf32>, vector<2x8x8xf32> -> vector<2x8x8xf32>
    "tpu.trace_stop"() : () -> ()
    %cst_37 = arith.constant 0.353553385 : f32
    %67 = vector.broadcast %cst_37 : f32 to vector<2x8x8xf32>
    %68 = arith.mulf %66, %67 : vector<2x8x8xf32>
    %69 = vector.broadcast %2 : vector<1x8x8xf32> to vector<2x8x8xf32>
    %70 = arith.addf %68, %69 : vector<2x8x8xf32>
    %cst_38 = arith.constant dense<0xFF800000> : vector<2x8xf32>
    %71 = vector.multi_reduction <maximumf>, %70, %cst_38 [2] : vector<2x8x8xf32> to vector<2x8xf32>
    %72 = vector.shape_cast %71 : vector<2x8xf32> to vector<2x8x1xf32>
    %73 = vector.broadcast %72 : vector<2x8x1xf32> to vector<2x8x8xf32>
    %74 = arith.subf %70, %73 : vector<2x8x8xf32>
    %75 = math.exp %74 : vector<2x8x8xf32>
    %cst_39 = arith.constant dense<0.000000e+00> : vector<2x8xf32>
    %76 = vector.multi_reduction <add>, %75, %cst_39 [2] : vector<2x8x8xf32> to vector<2x8xf32>
    %77 = vector.shape_cast %76 : vector<2x8xf32> to vector<2x8x1xf32>
    %78 = tpu.reciprocal %77 {approx = true} : vector<2x8x1xf32> -> vector<2x8x1xf32>
    %79 = vector.broadcast %78 : vector<2x8x1xf32> to vector<2x8x8xf32>
    %80 = arith.mulf %75, %79 : vector<2x8x8xf32>
    "tpu.trace_start"() <{level = 10 : i32, message = "bts,bsd->btd"}> : () -> ()
    %cst_40 = arith.constant dense<0.000000e+00> : vector<2x8x8xf32>
    %81 = tpu.matmul %80, %65, %cst_40 {dimension_numbers = #tpu.dot_dimension_numbers<[2], [1], [1], [2], [0, 0, 0, 1, 1, 2], [0], [0]>} : vector<2x8x8xf32>, vector<2x8x8xf32>, vector<2x8x8xf32> -> vector<2x8x8xf32>
    "tpu.trace_stop"() : () -> ()
    %82 = vector.extract_strided_slice %37 {offsets = [0, 16], sizes = [16, 8], strides = [1, 1]} : vector<16x96xf32> to vector<16x8xf32>
    %83 = vector.shape_cast %82 : vector<16x8xf32> to vector<2x8x8xf32>
    %84 = vector.extract_strided_slice %37 {offsets = [0, 48], sizes = [16, 8], strides = [1, 1]} : vector<16x96xf32> to vector<16x8xf32>
    %85 = vector.shape_cast %84 : vector<16x8xf32> to vector<2x8x8xf32>
    %86 = vector.extract_strided_slice %37 {offsets = [0, 80], sizes = [16, 8], strides = [1, 1]} : vector<16x96xf32> to vector<16x8xf32>
    %87 = vector.shape_cast %86 : vector<16x8xf32> to vector<2x8x8xf32>
    "tpu.trace_start"() <{level = 10 : i32, message = "btd,bsd->bts"}> : () -> ()
    %cst_41 = arith.constant dense<0.000000e+00> : vector<2x8x8xf32>
    %88 = tpu.matmul %83, %85, %cst_41 {dimension_numbers = #tpu.dot_dimension_numbers<[2], [2], [1], [1], [0, 0, 0, 1, 1, 1], [0], [0]>} : vector<2x8x8xf32>, vector<2x8x8xf32>, vector<2x8x8xf32> -> vector<2x8x8xf32>
    "tpu.trace_stop"() : () -> ()
    %cst_42 = arith.constant 0.353553385 : f32
    %89 = vector.broadcast %cst_42 : f32 to vector<2x8x8xf32>
    %90 = arith.mulf %88, %89 : vector<2x8x8xf32>
    %91 = vector.broadcast %2 : vector<1x8x8xf32> to vector<2x8x8xf32>
    %92 = arith.addf %90, %91 : vector<2x8x8xf32>
    %cst_43 = arith.constant dense<0xFF800000> : vector<2x8xf32>
    %93 = vector.multi_reduction <maximumf>, %92, %cst_43 [2] : vector<2x8x8xf32> to vector<2x8xf32>
    %94 = vector.shape_cast %93 : vector<2x8xf32> to vector<2x8x1xf32>
    %95 = vector.broadcast %94 : vector<2x8x1xf32> to vector<2x8x8xf32>
    %96 = arith.subf %92, %95 : vector<2x8x8xf32>
    %97 = math.exp %96 : vector<2x8x8xf32>
    %cst_44 = arith.constant dense<0.000000e+00> : vector<2x8xf32>
    %98 = vector.multi_reduction <add>, %97, %cst_44 [2] : vector<2x8x8xf32> to vector<2x8xf32>
    %99 = vector.shape_cast %98 : vector<2x8xf32> to vector<2x8x1xf32>
    %100 = tpu.reciprocal %99 {approx = true} : vector<2x8x1xf32> -> vector<2x8x1xf32>
    %101 = vector.broadcast %100 : vector<2x8x1xf32> to vector<2x8x8xf32>
    %102 = arith.mulf %97, %101 : vector<2x8x8xf32>
    "tpu.trace_start"() <{level = 10 : i32, message = "bts,bsd->btd"}> : () -> ()
    %cst_45 = arith.constant dense<0.000000e+00> : vector<2x8x8xf32>
    %103 = tpu.matmul %102, %87, %cst_45 {dimension_numbers = #tpu.dot_dimension_numbers<[2], [1], [1], [2], [0, 0, 0, 1, 1, 2], [0], [0]>} : vector<2x8x8xf32>, vector<2x8x8xf32>, vector<2x8x8xf32> -> vector<2x8x8xf32>
    "tpu.trace_stop"() : () -> ()
    %104 = vector.extract_strided_slice %37 {offsets = [0, 24], sizes = [16, 8], strides = [1, 1]} : vector<16x96xf32> to vector<16x8xf32>
    %105 = vector.shape_cast %104 : vector<16x8xf32> to vector<2x8x8xf32>
    %106 = vector.extract_strided_slice %37 {offsets = [0, 56], sizes = [16, 8], strides = [1, 1]} : vector<16x96xf32> to vector<16x8xf32>
    %107 = vector.shape_cast %106 : vector<16x8xf32> to vector<2x8x8xf32>
    %108 = vector.extract_strided_slice %37 {offsets = [0, 88], sizes = [16, 8], strides = [1, 1]} : vector<16x96xf32> to vector<16x8xf32>
    %109 = vector.shape_cast %108 : vector<16x8xf32> to vector<2x8x8xf32>
    "tpu.trace_start"() <{level = 10 : i32, message = "btd,bsd->bts"}> : () -> ()
    %cst_46 = arith.constant dense<0.000000e+00> : vector<2x8x8xf32>
    %110 = tpu.matmul %105, %107, %cst_46 {dimension_numbers = #tpu.dot_dimension_numbers<[2], [2], [1], [1], [0, 0, 0, 1, 1, 1], [0], [0]>} : vector<2x8x8xf32>, vector<2x8x8xf32>, vector<2x8x8xf32> -> vector<2x8x8xf32>
    "tpu.trace_stop"() : () -> ()
    %cst_47 = arith.constant 0.353553385 : f32
    %111 = vector.broadcast %cst_47 : f32 to vector<2x8x8xf32>
    %112 = arith.mulf %110, %111 : vector<2x8x8xf32>
    %113 = vector.broadcast %2 : vector<1x8x8xf32> to vector<2x8x8xf32>
    %114 = arith.addf %112, %113 : vector<2x8x8xf32>
    %cst_48 = arith.constant dense<0xFF800000> : vector<2x8xf32>
    %115 = vector.multi_reduction <maximumf>, %114, %cst_48 [2] : vector<2x8x8xf32> to vector<2x8xf32>
    %116 = vector.shape_cast %115 : vector<2x8xf32> to vector<2x8x1xf32>
    %117 = vector.broadcast %116 : vector<2x8x1xf32> to vector<2x8x8xf32>
    %118 = arith.subf %114, %117 : vector<2x8x8xf32>
    %119 = math.exp %118 : vector<2x8x8xf32>
    %cst_49 = arith.constant dense<0.000000e+00> : vector<2x8xf32>
    %120 = vector.multi_reduction <add>, %119, %cst_49 [2] : vector<2x8x8xf32> to vector<2x8xf32>
    %121 = vector.shape_cast %120 : vector<2x8xf32> to vector<2x8x1xf32>
    %122 = tpu.reciprocal %121 {approx = true} : vector<2x8x1xf32> -> vector<2x8x1xf32>
    %123 = vector.broadcast %122 : vector<2x8x1xf32> to vector<2x8x8xf32>
    %124 = arith.mulf %119, %123 : vector<2x8x8xf32>
    "tpu.trace_start"() <{level = 10 : i32, message = "bts,bsd->btd"}> : () -> ()
    %cst_50 = arith.constant dense<0.000000e+00> : vector<2x8x8xf32>
    %125 = tpu.matmul %124, %109, %cst_50 {dimension_numbers = #tpu.dot_dimension_numbers<[2], [1], [1], [2], [0, 0, 0, 1, 1, 2], [0], [0]>} : vector<2x8x8xf32>, vector<2x8x8xf32>, vector<2x8x8xf32> -> vector<2x8x8xf32>
    "tpu.trace_stop"() : () -> ()
    %126 = tpu.concatenate %59, %81, %103, %125 in 2 : vector<2x8x8xf32>, vector<2x8x8xf32>, vector<2x8x8xf32>, vector<2x8x8xf32> -> vector<2x8x32xf32>
    %127 = vector.shape_cast %126 : vector<2x8x32xf32> to vector<16x32xf32>
    %cst_51 = arith.constant dense<0.000000e+00> : vector<16x32xf32>
    %128 = tpu.matmul %127, %4, %cst_51 {dimension_numbers = #tpu.dot_dimension_numbers<[1], [0], [0], [1], [0, 0, 1, 1], [], []>} : vector<16x32xf32>, vector<32x32xf32>, vector<16x32xf32> -> vector<16x32xf32>
    %129 = arith.addf %14, %128 : vector<16x32xf32>
    %130 = vector.broadcast %5 : vector<1x32xf32> to vector<16x32xf32>
    %131 = arith.addf %129, %130 : vector<16x32xf32>
    %cst_52 = arith.constant dense<0.000000e+00> : vector<16xf32>
    %132 = vector.multi_reduction <add>, %131, %cst_52 [1] : vector<16x32xf32> to vector<16xf32>
    %133 = vector.shape_cast %132 : vector<16xf32> to vector<16x1xf32>
    %cst_53 = arith.constant 3.200000e+01 : f32
    %134 = vector.broadcast %cst_53 : f32 to vector<16x1xf32>
    %135 = arith.divf %133, %134 : vector<16x1xf32>
    %136 = vector.broadcast %135 : vector<16x1xf32> to vector<16x32xf32>
    %137 = arith.subf %131, %136 : vector<16x32xf32>
    %138 = arith.mulf %137, %137 : vector<16x32xf32>
    %cst_54 = arith.constant dense<0.000000e+00> : vector<16xf32>
    %139 = vector.multi_reduction <add>, %138, %cst_54 [1] : vector<16x32xf32> to vector<16xf32>
    %140 = vector.shape_cast %139 : vector<16xf32> to vector<16x1xf32>
    %cst_55 = arith.constant 3.200000e+01 : f32
    %141 = vector.broadcast %cst_55 : f32 to vector<16x1xf32>
    %142 = arith.divf %140, %141 : vector<16x1xf32>
    %143 = vector.broadcast %135 : vector<16x1xf32> to vector<16x32xf32>
    %144 = arith.subf %131, %143 : vector<16x32xf32>
    %cst_56 = arith.constant 9.99999974E-6 : f32
    %145 = vector.broadcast %cst_56 : f32 to vector<16x1xf32>
    %146 = arith.addf %142, %145 : vector<16x1xf32>
    %147 = math.rsqrt %146 : vector<16x1xf32>
    %148 = vector.broadcast %147 : vector<16x1xf32> to vector<16x32xf32>
    %149 = arith.mulf %144, %148 : vector<16x32xf32>
    %150 = vector.broadcast %12 : vector<1x32xf32> to vector<16x32xf32>
    %151 = arith.mulf %149, %150 : vector<16x32xf32>
    %152 = vector.broadcast %13 : vector<1x32xf32> to vector<16x32xf32>
    %153 = arith.addf %151, %152 : vector<16x32xf32>
    %cst_57 = arith.constant dense<0.000000e+00> : vector<16x64xf32>
    %154 = tpu.matmul %153, %6, %cst_57 {dimension_numbers = #tpu.dot_dimension_numbers<[1], [0], [0], [1], [0, 0, 1, 1], [], []>} : vector<16x32xf32>, vector<32x64xf32>, vector<16x64xf32> -> vector<16x64xf32>
    %155 = vector.broadcast %7 : vector<1x64xf32> to vector<16x64xf32>
    %156 = arith.addf %154, %155 : vector<16x64xf32>
    %cst_58 = arith.constant 0.000000e+00 : f32
    %157 = vector.broadcast %cst_58 : f32 to vector<16x64xf32>
    %158 = arith.maximumf %156, %157 : vector<16x64xf32>
    %cst_59 = arith.constant dense<0.000000e+00> : vector<16x32xf32>
    %159 = tpu.matmul %158, %8, %cst_59 {dimension_numbers = #tpu.dot_dimension_numbers<[1], [0], [0], [1], [0, 0, 1, 1], [], []>} : vector<16x64xf32>, vector<64x32xf32>, vector<16x32xf32> -> vector<16x32xf32>
    %160 = arith.addf %131, %159 : vector<16x32xf32>
    %161 = vector.broadcast %9 : vector<1x32xf32> to vector<16x32xf32>
    %162 = arith.addf %160, %161 : vector<16x32xf32>
    %cst_60 = arith.constant dense<0.000000e+00> : vector<16xf32>
    %163 = vector.multi_reduction <add>, %162, %cst_60 [1] : vector<16x32xf32> to vector<16xf32>
    %164 = vector.shape_cast %163 : vector<16xf32> to vector<16x1xf32>
    %cst_61 = arith.constant 3.200000e+01 : f32
    %165 = vector.broadcast %cst_61 : f32 to vector<16x1xf32>
    %166 = arith.divf %164, %165 : vector<16x1xf32>
    %167 = vector.broadcast %166 : vector<16x1xf32> to vector<16x32xf32>
    %168 = arith.subf %162, %167 : vector<16x32xf32>
    %169 = arith.mulf %168, %168 : vector<16x32xf32>
    %cst_62 = arith.constant dense<0.000000e+00> : vector<16xf32>
    %170 = vector.multi_reduction <add>, %169, %cst_62 [1] : vector<16x32xf32> to vector<16xf32>
    %171 = vector.shape_cast %170 : vector<16xf32> to vector<16x1xf32>
    %cst_63 = arith.constant 3.200000e+01 : f32
    %172 = vector.broadcast %cst_63 : f32 to vector<16x1xf32>
    %173 = arith.divf %171, %172 : vector<16x1xf32>
    %174 = vector.broadcast %166 : vector<16x1xf32> to vector<16x32xf32>
    %175 = arith.subf %162, %174 : vector<16x32xf32>
    %cst_64 = arith.constant 9.99999974E-6 : f32
    %176 = vector.broadcast %cst_64 : f32 to vector<16x1xf32>
    %177 = arith.addf %173, %176 : vector<16x1xf32>
    %178 = math.rsqrt %177 : vector<16x1xf32>
    %179 = vector.broadcast %178 : vector<16x1xf32> to vector<16x32xf32>
    %180 = arith.mulf %175, %179 : vector<16x32xf32>
    %181 = vector.broadcast %10 : vector<1x32xf32> to vector<16x32xf32>
    %182 = arith.mulf %180, %181 : vector<16x32xf32>
    %183 = vector.broadcast %11 : vector<1x32xf32> to vector<16x32xf32>
    %184 = arith.addf %182, %183 : vector<16x32xf32>
    %cst_65 = arith.constant dense<0.000000e+00> : vector<16x96xf32>
    %185 = tpu.matmul %184, %3, %cst_65 {dimension_numbers = #tpu.dot_dimension_numbers<[1], [0], [0], [1], [0, 0, 1, 1], [], []>} : vector<16x32xf32>, vector<32x96xf32>, vector<16x96xf32> -> vector<16x96xf32>
    %186 = vector.extract_strided_slice %185 {offsets = [0, 0], sizes = [16, 8], strides = [1, 1]} : vector<16x96xf32> to vector<16x8xf32>
    %187 = vector.shape_cast %186 : vector<16x8xf32> to vector<2x8x8xf32>
    %188 = vector.extract_strided_slice %185 {offsets = [0, 32], sizes = [16, 8], strides = [1, 1]} : vector<16x96xf32> to vector<16x8xf32>
    %189 = vector.shape_cast %188 : vector<16x8xf32> to vector<2x8x8xf32>
    %190 = vector.extract_strided_slice %185 {offsets = [0, 64], sizes = [16, 8], strides = [1, 1]} : vector<16x96xf32> to vector<16x8xf32>
    %191 = vector.shape_cast %190 : vector<16x8xf32> to vector<2x8x8xf32>
    "tpu.trace_start"() <{level = 10 : i32, message = "btd,bsd->bts"}> : () -> ()
    %cst_66 = arith.constant dense<0.000000e+00> : vector<2x8x8xf32>
    %192 = tpu.matmul %187, %189, %cst_66 {dimension_numbers = #tpu.dot_dimension_numbers<[2], [2], [1], [1], [0, 0, 0, 1, 1, 1], [0], [0]>} : vector<2x8x8xf32>, vector<2x8x8xf32>, vector<2x8x8xf32> -> vector<2x8x8xf32>
    "tpu.trace_stop"() : () -> ()
    %cst_67 = arith.constant 0.353553385 : f32
    %193 = vector.broadcast %cst_67 : f32 to vector<2x8x8xf32>
    %194 = arith.mulf %192, %193 : vector<2x8x8xf32>
    %195 = vector.broadcast %2 : vector<1x8x8xf32> to vector<2x8x8xf32>
    %196 = arith.addf %194, %195 : vector<2x8x8xf32>
    %cst_68 = arith.constant dense<0xFF800000> : vector<2x8xf32>
    %197 = vector.multi_reduction <maximumf>, %196, %cst_68 [2] : vector<2x8x8xf32> to vector<2x8xf32>
    %198 = vector.shape_cast %197 : vector<2x8xf32> to vector<2x8x1xf32>
    %199 = vector.broadcast %198 : vector<2x8x1xf32> to vector<2x8x8xf32>
    %200 = arith.subf %196, %199 : vector<2x8x8xf32>
    %201 = math.exp %200 : vector<2x8x8xf32>
    %cst_69 = arith.constant dense<0.000000e+00> : vector<2x8xf32>
    %202 = vector.multi_reduction <add>, %201, %cst_69 [2] : vector<2x8x8xf32> to vector<2x8xf32>
    %203 = vector.shape_cast %202 : vector<2x8xf32> to vector<2x8x1xf32>
    %204 = tpu.reciprocal %203 {approx = true} : vector<2x8x1xf32> -> vector<2x8x1xf32>
    %205 = vector.broadcast %204 : vector<2x8x1xf32> to vector<2x8x8xf32>
    %206 = arith.mulf %201, %205 : vector<2x8x8xf32>
    "tpu.trace_start"() <{level = 10 : i32, message = "bts,bsd->btd"}> : () -> ()
    %cst_70 = arith.constant dense<0.000000e+00> : vector<2x8x8xf32>
    %207 = tpu.matmul %206, %191, %cst_70 {dimension_numbers = #tpu.dot_dimension_numbers<[2], [1], [1], [2], [0, 0, 0, 1, 1, 2], [0], [0]>} : vector<2x8x8xf32>, vector<2x8x8xf32>, vector<2x8x8xf32> -> vector<2x8x8xf32>
    "tpu.trace_stop"() : () -> ()
    %208 = vector.extract_strided_slice %185 {offsets = [0, 8], sizes = [16, 8], strides = [1, 1]} : vector<16x96xf32> to vector<16x8xf32>
    %209 = vector.shape_cast %208 : vector<16x8xf32> to vector<2x8x8xf32>
    %210 = vector.extract_strided_slice %185 {offsets = [0, 40], sizes = [16, 8], strides = [1, 1]} : vector<16x96xf32> to vector<16x8xf32>
    %211 = vector.shape_cast %210 : vector<16x8xf32> to vector<2x8x8xf32>
    %212 = vector.extract_strided_slice %185 {offsets = [0, 72], sizes = [16, 8], strides = [1, 1]} : vector<16x96xf32> to vector<16x8xf32>
    %213 = vector.shape_cast %212 : vector<16x8xf32> to vector<2x8x8xf32>
    "tpu.trace_start"() <{level = 10 : i32, message = "btd,bsd->bts"}> : () -> ()
    %cst_71 = arith.constant dense<0.000000e+00> : vector<2x8x8xf32>
    %214 = tpu.matmul %209, %211, %cst_71 {dimension_numbers = #tpu.dot_dimension_numbers<[2], [2], [1], [1], [0, 0, 0, 1, 1, 1], [0], [0]>} : vector<2x8x8xf32>, vector<2x8x8xf32>, vector<2x8x8xf32> -> vector<2x8x8xf32>
    "tpu.trace_stop"() : () -> ()
    %cst_72 = arith.constant 0.353553385 : f32
    %215 = vector.broadcast %cst_72 : f32 to vector<2x8x8xf32>
    %216 = arith.mulf %214, %215 : vector<2x8x8xf32>
    %217 = vector.broadcast %2 : vector<1x8x8xf32> to vector<2x8x8xf32>
    %218 = arith.addf %216, %217 : vector<2x8x8xf32>
    %cst_73 = arith.constant dense<0xFF800000> : vector<2x8xf32>
    %219 = vector.multi_reduction <maximumf>, %218, %cst_73 [2] : vector<2x8x8xf32> to vector<2x8xf32>
    %220 = vector.shape_cast %219 : vector<2x8xf32> to vector<2x8x1xf32>
    %221 = vector.broadcast %220 : vector<2x8x1xf32> to vector<2x8x8xf32>
    %222 = arith.subf %218, %221 : vector<2x8x8xf32>
    %223 = math.exp %222 : vector<2x8x8xf32>
    %cst_74 = arith.constant dense<0.000000e+00> : vector<2x8xf32>
    %224 = vector.multi_reduction <add>, %223, %cst_74 [2] : vector<2x8x8xf32> to vector<2x8xf32>
    %225 = vector.shape_cast %224 : vector<2x8xf32> to vector<2x8x1xf32>
    %226 = tpu.reciprocal %225 {approx = true} : vector<2x8x1xf32> -> vector<2x8x1xf32>
    %227 = vector.broadcast %226 : vector<2x8x1xf32> to vector<2x8x8xf32>
    %228 = arith.mulf %223, %227 : vector<2x8x8xf32>
    "tpu.trace_start"() <{level = 10 : i32, message = "bts,bsd->btd"}> : () -> ()
    %cst_75 = arith.constant dense<0.000000e+00> : vector<2x8x8xf32>
    %229 = tpu.matmul %228, %213, %cst_75 {dimension_numbers = #tpu.dot_dimension_numbers<[2], [1], [1], [2], [0, 0, 0, 1, 1, 2], [0], [0]>} : vector<2x8x8xf32>, vector<2x8x8xf32>, vector<2x8x8xf32> -> vector<2x8x8xf32>
    "tpu.trace_stop"() : () -> ()
    %230 = vector.extract_strided_slice %185 {offsets = [0, 16], sizes = [16, 8], strides = [1, 1]} : vector<16x96xf32> to vector<16x8xf32>
    %231 = vector.shape_cast %230 : vector<16x8xf32> to vector<2x8x8xf32>
    %232 = vector.extract_strided_slice %185 {offsets = [0, 48], sizes = [16, 8], strides = [1, 1]} : vector<16x96xf32> to vector<16x8xf32>
    %233 = vector.shape_cast %232 : vector<16x8xf32> to vector<2x8x8xf32>
    %234 = vector.extract_strided_slice %185 {offsets = [0, 80], sizes = [16, 8], strides = [1, 1]} : vector<16x96xf32> to vector<16x8xf32>
    %235 = vector.shape_cast %234 : vector<16x8xf32> to vector<2x8x8xf32>
    "tpu.trace_start"() <{level = 10 : i32, message = "btd,bsd->bts"}> : () -> ()
    %cst_76 = arith.constant dense<0.000000e+00> : vector<2x8x8xf32>
    %236 = tpu.matmul %231, %233, %cst_76 {dimension_numbers = #tpu.dot_dimension_numbers<[2], [2], [1], [1], [0, 0, 0, 1, 1, 1], [0], [0]>} : vector<2x8x8xf32>, vector<2x8x8xf32>, vector<2x8x8xf32> -> vector<2x8x8xf32>
    "tpu.trace_stop"() : () -> ()
    %cst_77 = arith.constant 0.353553385 : f32
    %237 = vector.broadcast %cst_77 : f32 to vector<2x8x8xf32>
    %238 = arith.mulf %236, %237 : vector<2x8x8xf32>
    %239 = vector.broadcast %2 : vector<1x8x8xf32> to vector<2x8x8xf32>
    %240 = arith.addf %238, %239 : vector<2x8x8xf32>
    %cst_78 = arith.constant dense<0xFF800000> : vector<2x8xf32>
    %241 = vector.multi_reduction <maximumf>, %240, %cst_78 [2] : vector<2x8x8xf32> to vector<2x8xf32>
    %242 = vector.shape_cast %241 : vector<2x8xf32> to vector<2x8x1xf32>
    %243 = vector.broadcast %242 : vector<2x8x1xf32> to vector<2x8x8xf32>
    %244 = arith.subf %240, %243 : vector<2x8x8xf32>
    %245 = math.exp %244 : vector<2x8x8xf32>
    %cst_79 = arith.constant dense<0.000000e+00> : vector<2x8xf32>
    %246 = vector.multi_reduction <add>, %245, %cst_79 [2] : vector<2x8x8xf32> to vector<2x8xf32>
    %247 = vector.shape_cast %246 : vector<2x8xf32> to vector<2x8x1xf32>
    %248 = tpu.reciprocal %247 {approx = true} : vector<2x8x1xf32> -> vector<2x8x1xf32>
    %249 = vector.broadcast %248 : vector<2x8x1xf32> to vector<2x8x8xf32>
    %250 = arith.mulf %245, %249 : vector<2x8x8xf32>
    "tpu.trace_start"() <{level = 10 : i32, message = "bts,bsd->btd"}> : () -> ()
    %cst_80 = arith.constant dense<0.000000e+00> : vector<2x8x8xf32>
    %251 = tpu.matmul %250, %235, %cst_80 {dimension_numbers = #tpu.dot_dimension_numbers<[2], [1], [1], [2], [0, 0, 0, 1, 1, 2], [0], [0]>} : vector<2x8x8xf32>, vector<2x8x8xf32>, vector<2x8x8xf32> -> vector<2x8x8xf32>
    "tpu.trace_stop"() : () -> ()
    %252 = vector.extract_strided_slice %185 {offsets = [0, 24], sizes = [16, 8], strides = [1, 1]} : vector<16x96xf32> to vector<16x8xf32>
    %253 = vector.shape_cast %252 : vector<16x8xf32> to vector<2x8x8xf32>
    %254 = vector.extract_strided_slice %185 {offsets = [0, 56], sizes = [16, 8], strides = [1, 1]} : vector<16x96xf32> to vector<16x8xf32>
    %255 = vector.shape_cast %254 : vector<16x8xf32> to vector<2x8x8xf32>
    %256 = vector.extract_strided_slice %185 {offsets = [0, 88], sizes = [16, 8], strides = [1, 1]} : vector<16x96xf32> to vector<16x8xf32>
    %257 = vector.shape_cast %256 : vector<16x8xf32> to vector<2x8x8xf32>
    "tpu.trace_start"() <{level = 10 : i32, message = "btd,bsd->bts"}> : () -> ()
    %cst_81 = arith.constant dense<0.000000e+00> : vector<2x8x8xf32>
    %258 = tpu.matmul %253, %255, %cst_81 {dimension_numbers = #tpu.dot_dimension_numbers<[2], [2], [1], [1], [0, 0, 0, 1, 1, 1], [0], [0]>} : vector<2x8x8xf32>, vector<2x8x8xf32>, vector<2x8x8xf32> -> vector<2x8x8xf32>
    "tpu.trace_stop"() : () -> ()
    %cst_82 = arith.constant 0.353553385 : f32
    %259 = vector.broadcast %cst_82 : f32 to vector<2x8x8xf32>
    %260 = arith.mulf %258, %259 : vector<2x8x8xf32>
    %261 = vector.broadcast %2 : vector<1x8x8xf32> to vector<2x8x8xf32>
    %262 = arith.addf %260, %261 : vector<2x8x8xf32>
    %cst_83 = arith.constant dense<0xFF800000> : vector<2x8xf32>
    %263 = vector.multi_reduction <maximumf>, %262, %cst_83 [2] : vector<2x8x8xf32> to vector<2x8xf32>
    %264 = vector.shape_cast %263 : vector<2x8xf32> to vector<2x8x1xf32>
    %265 = vector.broadcast %264 : vector<2x8x1xf32> to vector<2x8x8xf32>
    %266 = arith.subf %262, %265 : vector<2x8x8xf32>
    %267 = math.exp %266 : vector<2x8x8xf32>
    %cst_84 = arith.constant dense<0.000000e+00> : vector<2x8xf32>
    %268 = vector.multi_reduction <add>, %267, %cst_84 [2] : vector<2x8x8xf32> to vector<2x8xf32>
    %269 = vector.shape_cast %268 : vector<2x8xf32> to vector<2x8x1xf32>
    %270 = tpu.reciprocal %269 {approx = true} : vector<2x8x1xf32> -> vector<2x8x1xf32>
    %271 = vector.broadcast %270 : vector<2x8x1xf32> to vector<2x8x8xf32>
    %272 = arith.mulf %267, %271 : vector<2x8x8xf32>
    "tpu.trace_start"() <{level = 10 : i32, message = "bts,bsd->btd"}> : () -> ()
    %cst_85 = arith.constant dense<0.000000e+00> : vector<2x8x8xf32>
    %273 = tpu.matmul %272, %257, %cst_85 {dimension_numbers = #tpu.dot_dimension_numbers<[2], [1], [1], [2], [0, 0, 0, 1, 1, 2], [0], [0]>} : vector<2x8x8xf32>, vector<2x8x8xf32>, vector<2x8x8xf32> -> vector<2x8x8xf32>
    "tpu.trace_stop"() : () -> ()
    %274 = tpu.concatenate %207, %229, %251, %273 in 2 : vector<2x8x8xf32>, vector<2x8x8xf32>, vector<2x8x8xf32>, vector<2x8x8xf32> -> vector<2x8x32xf32>
    %275 = vector.shape_cast %274 : vector<2x8x32xf32> to vector<16x32xf32>
    %cst_86 = arith.constant dense<0.000000e+00> : vector<16x32xf32>
    %276 = tpu.matmul %275, %4, %cst_86 {dimension_numbers = #tpu.dot_dimension_numbers<[1], [0], [0], [1], [0, 0, 1, 1], [], []>} : vector<16x32xf32>, vector<32x32xf32>, vector<16x32xf32> -> vector<16x32xf32>
    %277 = arith.addf %162, %276 : vector<16x32xf32>
    %278 = vector.broadcast %5 : vector<1x32xf32> to vector<16x32xf32>
    %279 = arith.addf %277, %278 : vector<16x32xf32>
    %cst_87 = arith.constant dense<0.000000e+00> : vector<16xf32>
    %280 = vector.multi_reduction <add>, %279, %cst_87 [1] : vector<16x32xf32> to vector<16xf32>
    %281 = vector.shape_cast %280 : vector<16xf32> to vector<16x1xf32>
    %cst_88 = arith.constant 3.200000e+01 : f32
    %282 = vector.broadcast %cst_88 : f32 to vector<16x1xf32>
    %283 = arith.divf %281, %282 : vector<16x1xf32>
    %284 = vector.broadcast %283 : vector<16x1xf32> to vector<16x32xf32>
    %285 = arith.subf %279, %284 : vector<16x32xf32>
    %286 = arith.mulf %285, %285 : vector<16x32xf32>
    %cst_89 = arith.constant dense<0.000000e+00> : vector<16xf32>
    %287 = vector.multi_reduction <add>, %286, %cst_89 [1] : vector<16x32xf32> to vector<16xf32>
    %288 = vector.shape_cast %287 : vector<16xf32> to vector<16x1xf32>
    %cst_90 = arith.constant 3.200000e+01 : f32
    %289 = vector.broadcast %cst_90 : f32 to vector<16x1xf32>
    %290 = arith.divf %288, %289 : vector<16x1xf32>
    %291 = vector.broadcast %283 : vector<16x1xf32> to vector<16x32xf32>
    %292 = arith.subf %279, %291 : vector<16x32xf32>
    %cst_91 = arith.constant 9.99999974E-6 : f32
    %293 = vector.broadcast %cst_91 : f32 to vector<16x1xf32>
    %294 = arith.addf %290, %293 : vector<16x1xf32>
    %295 = math.rsqrt %294 : vector<16x1xf32>
    %296 = vector.broadcast %295 : vector<16x1xf32> to vector<16x32xf32>
    %297 = arith.mulf %292, %296 : vector<16x32xf32>
    %298 = vector.broadcast %12 : vector<1x32xf32> to vector<16x32xf32>
    %299 = arith.mulf %297, %298 : vector<16x32xf32>
    %300 = vector.broadcast %13 : vector<1x32xf32> to vector<16x32xf32>
    %301 = arith.addf %299, %300 : vector<16x32xf32>
    %cst_92 = arith.constant dense<0.000000e+00> : vector<16x64xf32>
    %302 = tpu.matmul %301, %6, %cst_92 {dimension_numbers = #tpu.dot_dimension_numbers<[1], [0], [0], [1], [0, 0, 1, 1], [], []>} : vector<16x32xf32>, vector<32x64xf32>, vector<16x64xf32> -> vector<16x64xf32>
    %303 = vector.broadcast %7 : vector<1x64xf32> to vector<16x64xf32>
    %304 = arith.addf %302, %303 : vector<16x64xf32>
    %cst_93 = arith.constant 0.000000e+00 : f32
    %305 = vector.broadcast %cst_93 : f32 to vector<16x64xf32>
    %306 = arith.maximumf %304, %305 : vector<16x64xf32>
    %cst_94 = arith.constant dense<0.000000e+00> : vector<16x32xf32>
    %307 = tpu.matmul %306, %8, %cst_94 {dimension_numbers = #tpu.dot_dimension_numbers<[1], [0], [0], [1], [0, 0, 1, 1], [], []>} : vector<16x64xf32>, vector<64x32xf32>, vector<16x32xf32> -> vector<16x32xf32>
    %308 = arith.addf %279, %307 : vector<16x32xf32>
    %309 = vector.broadcast %9 : vector<1x32xf32> to vector<16x32xf32>
    %310 = arith.addf %308, %309 : vector<16x32xf32>
    %c0_95 = arith.constant 0 : index
    %c0_96 = arith.constant 0 : index
    %311 = vector.load %arg13[%c0_95, %c0_96] : memref<1x32xf32, #tpu.memory_space<vmem>>, vector<1x32xf32>
    %c0_97 = arith.constant 0 : index
    %c0_98 = arith.constant 0 : index
    %312 = vector.load %arg14[%c0_97, %c0_98] : memref<1x32xf32, #tpu.memory_space<vmem>>, vector<1x32xf32>
    %cst_99 = arith.constant dense<0.000000e+00> : vector<16xf32>
    %313 = vector.multi_reduction <add>, %310, %cst_99 [1] : vector<16x32xf32> to vector<16xf32>
    %314 = vector.shape_cast %313 : vector<16xf32> to vector<16x1xf32>
    %cst_100 = arith.constant 3.200000e+01 : f32
    %315 = vector.broadcast %cst_100 : f32 to vector<16x1xf32>
    %316 = arith.divf %314, %315 : vector<16x1xf32>
    %317 = vector.broadcast %316 : vector<16x1xf32> to vector<16x32xf32>
    %318 = arith.subf %310, %317 : vector<16x32xf32>
    %319 = arith.mulf %318, %318 : vector<16x32xf32>
    %cst_101 = arith.constant dense<0.000000e+00> : vector<16xf32>
    %320 = vector.multi_reduction <add>, %319, %cst_101 [1] : vector<16x32xf32> to vector<16xf32>
    %321 = vector.shape_cast %320 : vector<16xf32> to vector<16x1xf32>
    %cst_102 = arith.constant 3.200000e+01 : f32
    %322 = vector.broadcast %cst_102 : f32 to vector<16x1xf32>
    %323 = arith.divf %321, %322 : vector<16x1xf32>
    %324 = vector.broadcast %316 : vector<16x1xf32> to vector<16x32xf32>
    %325 = arith.subf %310, %324 : vector<16x32xf32>
    %cst_103 = arith.constant 9.99999974E-6 : f32
    %326 = vector.broadcast %cst_103 : f32 to vector<16x1xf32>
    %327 = arith.addf %323, %326 : vector<16x1xf32>
    %328 = math.rsqrt %327 : vector<16x1xf32>
    %329 = vector.broadcast %328 : vector<16x1xf32> to vector<16x32xf32>
    %330 = arith.mulf %325, %329 : vector<16x32xf32>
    %331 = vector.broadcast %311 : vector<1x32xf32> to vector<16x32xf32>
    %332 = arith.mulf %330, %331 : vector<16x32xf32>
    %333 = vector.broadcast %312 : vector<1x32xf32> to vector<16x32xf32>
    %334 = arith.addf %332, %333 : vector<16x32xf32>
    %c0_104 = arith.constant 0 : index
    %c0_105 = arith.constant 0 : index
    %335 = vector.load %arg15[%c0_104, %c0_105] : memref<32x32xf32, #tpu.memory_space<vmem>>, vector<32x32xf32>
    %cst_106 = arith.constant dense<0.000000e+00> : vector<16x32xf32>
    %336 = tpu.matmul %334, %335, %cst_106 {dimension_numbers = #tpu.dot_dimension_numbers<[1], [0], [0], [1], [0, 0, 1, 1], [], []>} : vector<16x32xf32>, vector<32x32xf32>, vector<16x32xf32> -> vector<16x32xf32>
    %c0_107 = arith.constant 0 : index
    %c0_108 = arith.constant 0 : index
    %337 = vector.load %arg16[%c0_107, %c0_108] : memref<1x32xf32, #tpu.memory_space<vmem>>, vector<1x32xf32>
    %338 = vector.broadcast %337 : vector<1x32xf32> to vector<16x32xf32>
    %339 = arith.addf %336, %338 : vector<16x32xf32>
    %340 = vector.shape_cast %339 : vector<16x32xf32> to vector<2x8x32xf32>
    %c0_109 = arith.constant 0 : index
    %c0_110 = arith.constant 0 : index
    %c0_111 = arith.constant 0 : index
    %341 = vector.load %arg17[%c0_109, %c0_110, %c0_111] : memref<2x8x32xf32, #tpu.memory_space<vmem>>, vector<2x8x32xf32>
    tpu.vector_store %arg17[%c0_109, %c0_110, %c0_111], %340 {strides = array<i32>} : memref<2x8x32xf32, #tpu.memory_space<vmem>>, vector<2x8x32xf32>,
    return
  }
}

</mosaic_0001>

<bundles_post_ra>
// kernel: tpu_custom_call.1
= control target key start
LH: loop header
LB: loop body
LE: loop exit
PB: predicated region body
PF: predicated region fallthrough
CT: control target
= control target key end

     0   :  { %s5392_s0 = inlined_call_operand.hbm [shape: f32[2,8,32], index: 0, kind: input, shape index: {}]   ;;  %s5393_s1 = inlined_call_operand.hbm [shape: f32[8,8], index: 1, kind: input, shape index: {}]   ;;  %s5394_s2 = inlined_call_operand.vmem [shape: f32[1,32], index: 2, kind: input, shape index: {}]   ;;  %s5395_s3 = inlined_call_operand.vmem [shape: f32[1,32], index: 3, kind: input, shape index: {}]   ;;  %s5396_s4 = inlined_call_operand.vmem [shape: f32[32,96], index: 4, kind: input, shape index: {}]   ;;  %s5397_s5 = inlined_call_operand.vmem [shape: f32[32,32], index: 5, kind: input, shape index: {}]   ;;  %s5398_s6 = inlined_call_operand.vmem [shape: f32[1,32], index: 6, kind: input, shape index: {}]   ;;  %s5399_s7 = inlined_call_operand.vmem [shape: f32[1,32], index: 7, kind: input, shape index: {}]   ;;  %s5400_s8 = inlined_call_operand.vmem [shape: f32[1,32], index: 8, kind: input, shape index: {}]   ;;  %s5401_s9 = inlined_call_operand.vmem [shape: f32[32,64], index: 9, kind: input, shape index: {}]   ;;  %s5402_s10 = inlined_call_operand.vmem [shape: f32[1,64], index: 10, kind: input, shape index: {}]   ;;  %s5403_s11 = inlined_call_operand.vmem [shape: f32[64,32], index: 11, kind: input, shape index: {}]   ;;  %s5404_s12 = inlined_call_operand.vmem [shape: f32[1,32], index: 12, kind: input, shape index: {}]   ;;  %s5405_s13 = inlined_call_operand.vmem [shape: f32[1,32], index: 13, kind: input, shape index: {}]   ;;  %s5406_s14 = inlined_call_operand.vmem [shape: f32[1,32], index: 14, kind: input, shape index: {}]   ;;  %s5407_s15 = inlined_call_operand.hbm [shape: f32[32,32], index: 15, kind: input, shape index: {}]   ;;  %s5408_s16 = inlined_call_operand.vmem [shape: f32[1,32], index: 16, kind: input, shape index: {}]   ;;  %s5409_s17 = inlined_call_operand.hbm [shape: f32[2,8,32], index: 17, kind: output, shape index: {}]  }
   0x1   :  { %5416 = sst [smem:[#allocation12_spill]] %s5392_s0 }
   0x2   :  { %5417 = sst [smem:[#allocation13_spill]] %s5393_s1 }
   0x3   :  { %5418 = sst [smem:[#allocation14_spill]] %s5409_s17 }
   0x4   :  { %22 = vsyncpa [#allocation3], 0 }
   0x5   :  { %23 = vsyncpa [#allocation6], 0 }
   0x6   :  { %24 = vsyncpa [#allocation4], 0  ;;  %s4611_s24 = smov [#allocation5]   ;;  %s4612_s26 = smov [#allocation2]  }
   0x7   :  { %s43_s25 = sshll.u32 %s4611_s24, 4  ;;  %s30_s27 = sshll.u32 %s4612_s26, 4  ;;  %s44_s25 = int_to_ptr.vmem [resolvable:$true] %s43_s25  ;;  %s4722_s27 = int_to_ptr.vmem [resolvable:$true] %s30_s27 }
   0x8   :  { %s5419_s0 = sld [smem:[#allocation13_spill]] }
   0xe   :  { %s4517_s30 = scalar_lea.hbm %s5419_s0, 128 }
   0xf   :  { %p4518_p0 = scmp.ne.s32.totalorder %s5419_s0, %s4517_s30  ;;  %p4521_p1 = scmp.lt.u32.totalorder %s4517_s30, %s5419_s0 }
  0x11   :  { %p4523_p2 = pnand %p4521_p1, %p4518_p0 }
  0x13   :  { %4526 = shalt.err (!%p4523_p2)
}
  0x14   :  { %s4527_s21 = scalar_lea.vmem %s44_s25, 128  ;;  %p4532_p4 = scmp.lt.s32.totalorder %s44_s25, %s44_s25 }
  0x15   :  { %p4528_p3 = scmp.ne.s32.totalorder %s44_s25, %s4527_s21  ;;  %p4533_p5 = scmp.lt.s32.totalorder %s4527_s21, %s4527_s21 }
  0x17   :  { %p4534_p6 = por %p4533_p5, %p4532_p4 }
  0x19   :  { %p4535_p7 = pnand %p4534_p6, %p4528_p3 }
  0x1b   :  { %4538 = shalt.err (!%p4535_p7)
}
  0x1c   :  { %46 = dma.hbm_to_vmem [thread:$0]  %s5419_s0, 128, %s44_s25, [#allocation6]  }
  0x1d   :  { %s5420_s28 = sld [smem:[#allocation12_spill]] }
  0x23   :  { %s4539_s29 = scalar_lea.hbm %s5420_s28, 256 }
  0x24   :  { %p4540_p8 = scmp.ne.s32.totalorder %s5420_s28, %s4539_s29  ;;  %p4543_p9 = scmp.lt.u32.totalorder %s4539_s29, %s5420_s28 }
  0x26   :  { %p4545_p10 = pnand %p4543_p9, %p4540_p8 }
  0x28   :  { %4548 = shalt.err (!%p4545_p10)
}
  0x29   :  { %s4549_s20 = scalar_lea.vmem %s4722_s27, 256  ;;  %p4554_p12 = scmp.lt.s32.totalorder %s4722_s27, %s4722_s27 }
  0x2a   :  { %p4550_p11 = scmp.ne.s32.totalorder %s4722_s27, %s4549_s20  ;;  %p4555_p13 = scmp.lt.s32.totalorder %s4549_s20, %s4549_s20 }
  0x2c   :  { %p4556_p0 = por %p4555_p13, %p4554_p12 }
  0x2e   :  { %p4557_p1 = pnand %p4556_p0, %p4550_p11 }
  0x30   :  { %4560 = shalt.err (!%p4557_p1)
}
  0x31   :  { %s5413_s25 = smov 128   ;;  %s4614_s0 = smov 8  }
  0x32   :  { %36 = dma.hbm_to_vmem [thread:$0]  %s5420_s28, 256, %s4722_s27, [#allocation3], %s5413_s25, %s5413_s25, %s4614_s0  }
  0x33   :  { %s4615_s23 = smov [#allocation7]   ;;  %s4561_s18 = scalar_lea.hbm %s5407_s15, 512 }
  0x34   :  { %s78_s24 = sshll.u32 %s4615_s23, 4  ;;  %p4562_p2 = scmp.ne.s32.totalorder %s5407_s15, %s4561_s18  ;;  %s79_s24 = int_to_ptr.vmem [resolvable:$true] %s78_s24 }
  0x35   :  { %p4565_p3 = scmp.lt.u32.totalorder %s4561_s18, %s5407_s15 }
  0x37   :  { %p4567_p4 = pnand %p4565_p3, %p4562_p2 }
  0x39   :  { %4570 = shalt.err (!%p4567_p4)
}
  0x3a   :  { %s4571_s17 = scalar_lea.vmem %s79_s24, 512  ;;  %p4576_p6 = scmp.lt.s32.totalorder %s79_s24, %s79_s24 }
  0x3b   :  { %p4572_p5 = scmp.ne.s32.totalorder %s79_s24, %s4571_s17  ;;  %p4577_p7 = scmp.lt.s32.totalorder %s4571_s17, %s4571_s17 }
  0x3d   :  { %p4578_p8 = por %p4577_p7, %p4576_p6 }
  0x3f   :  { %p4579_p9 = pnand %p4578_p8, %p4572_p5 }
  0x41   :  { %4582 = shalt.err (!%p4579_p9)
}
  0x42   :  { %84 = dma.hbm_to_vmem [thread:$0]  %s5407_s15, 512, %s79_s24, [#allocation6], %s5413_s25, %s5413_s25, %s4614_s0  }
  0x43   :  { %4605 = dma.done.wait [#allocation3], 256  }
  0x44   :  { %4606 = vsyncadd [#allocation3], 4294967040 }
  0x45   :  { %4607 = dma.done.wait [#allocation6], 640  }
  0x46   :  { %4608 = vsyncadd [#allocation6], 4294966656  ;;  %vm126_vm0 = vcmask 261120   ;;  %v4771_v0 = vld [vmem:[#allocation2] sm:$0xff]  ;;  %v4773_v1 = vld [vmem:[#allocation2 + $0x8] sm:$0xff]  ;;  %v4616_v36 = vmov 0.0  }
  0x47   :  { %v127_v2 = vsel %vm126_vm0, %v4771_v0, 0.0  ;;  %v130_v3 = vsel %vm126_vm0, %v4773_v1, 0.0  ;;  %v99_v14 = vld [vmem:[%s5396_s4] sm:$0xff]  ;;  %v100_v15 = vld [vmem:[%s5396_s4 + $0x8] sm:$0xff]  ;;  %v101_v16 = vld [vmem:[%s5396_s4 + $0x10] sm:$0xff]  ;;  %4059 = vmatprep.subr.mxu1 %v4616_v36  ;;  %vm4617_vm1 = vmmov 0  }
  0x48   :  { %128 = vadd.xlane.f32.xlu0 %v127_v2  ;;  %v4792_v17 = vpack.c.bf16 %v100_v15, %v99_v14  ;;  %v102_v18 = vld [vmem:[%s5396_s4 + $0x18] sm:$0xff]  ;;  %v4806_v27 = vld [vmem:[%s5394_s2] ss:$0 sm:$0xff]  ;;  %4061 = vmatprep.mubr.msk.f32.mxu1 %vm4617_vm1, %v4616_v36  ;;  %s4618_s2 = smov 96   ;;  %vm254_vm2 = vcmask 64512   ;;  %v4845_v42 = vld [vmem:[#allocation5] sm:$0xff] }
  0x49   :  { %v4797_v19 = vpack.c.bf16 %v102_v18, %v101_v16  ;;  %v4811_v29 = vld [vmem:[%s5395_s3] ss:$0 sm:$0xff]  ;;  %s4619_s3 = smov 64   ;;  %s4620_s1 = smov 88   ;;  %vm1615_vm3 = vcmask 195584   ;;  %vm1612_vm4 = vcmask 130048  }
  0x4a   :  { %4324 = vmatprep.subr.bf16.mxu0 %v4792_v17  ;;  %s4621_s20 = smov 120   ;;  %s4622_s27 = smov 56   ;;  %vm1840_vm5 = vcmask 523264  }
  0x4b   :  { %4326 = vmatpush3.bf16.msra.mxu0 %v4792_v17  ;;  %s4623_s28 = smov 80   ;;  %s4624_s15 = smov 112  }
  0x4c   :  { %131 = vadd.xlane.f32.xlu0 %v130_v3  ;;  %4328 = vmatprep.subr.bf16.mxu0 %v4797_v19  ;;  %s4625_s17 = smov 48   ;;  %s4626_s21 = smov 72  }
  0x4d   :  { %s4627_s22 = smov 104   ;;  %s4628_s23 = smov 40  }
  0x4e   :  { %s5414_s24 = smov 16   ;;  %s4630_s26 = smov 24  }
  0x4f   :  { %4330 = vmatpush3.bf16.msra.mxu0 %v4797_v19 }
  0x50   :  { %4079 = vmatprep.subr.mxu0 %v4616_v36 }
  0xd5   :  { %v129_v4 = vpop.xlane.xlu0 %128 }
  0xd6   :  { %v134_v5 = vmul.f32 0.03125, %v129_v4 }
  0xd8   :  { %v136_v6 = vsub.f32 %v4771_v0, %v134_v5 }
  0xd9   :  { %v132_v7 = vpop.xlane.xlu0 %131 }
  0xda   :  { %v135_v8 = vmul.f32 0.03125, %v132_v7  ;;  %v138_v9 = vmul.f32 %v136_v6, %v136_v6 }
  0xdc   :  { %v137_v10 = vsub.f32 %v4773_v1, %v135_v8  ;;  %v140_v11 = vsel %vm126_vm0, %v138_v9, 0.0 }
  0xdd   :  { %141 = vadd.xlane.f32.xlu1 %v140_v11 }
  0xde   :  { %v139_v12 = vmul.f32 %v137_v10, %v137_v10 }
  0xe0   :  { %v143_v13 = vsel %vm126_vm0, %v139_v12, 0.0 }
  0xe1   :  { %144 = vadd.xlane.f32.xlu1 %v143_v13 }
 0x16a   :  { %v142_v20 = vpop.xlane.xlu1 %141 }
 0x16b   :  { %v146_v21 = vmul.f32 0.03125, %v142_v20 }
 0x16d   :  { %v148_v22 = vadd.f32 1e-05, %v146_v21 }
 0x16e   :  { %v145_v23 = vpop.xlane.xlu1 %144 }
 0x16f   :  { %4432 = vrsqrt.f32 %v148_v22  ;;  %v147_v24 = vmul.f32 0.03125, %v145_v23 }
 0x171   :  { %v149_v25 = vadd.f32 1e-05, %v147_v24 }
 0x173   :  { %4434 = vrsqrt.f32 %v149_v25 }
 0x179   :  { %v4433_v26 = vpop.eup %4432 }
 0x17a   :  { %v152_v28 = vmul.f32 %v4433_v26, %v136_v6 }
 0x17c   :  { %v160_v30 = vmul.f32 %v4806_v27, %v152_v28 }
 0x17d   :  { %v4435_v31 = vpop.eup %4434 }
 0x17e   :  { %v168_v32 = vadd.f32 %v4811_v29, %v160_v30  ;;  %v153_v33 = vmul.f32 %v4435_v31, %v137_v10 }
 0x180   :  { %4056 = vmatprep.mubr.msk.f32.mxu0 %vm126_vm0, %v168_v32  ;;  %v161_v34 = vmul.f32 %v4806_v27, %v153_v33 }
 0x182   :  { %v169_v35 = vadd.f32 %v4811_v29, %v161_v34 }
 0x184   :  { %4057 = vmatmul.mubr.msk.f32.vlgmr.msra.gmra.mrb[0].mxu0 %vm126_vm0, %v169_v35 }
 0x185   :  { %4081 = vmatprep.mubr.msk.f32.mxu0 %vm4617_vm1, %v4616_v36 }
 0x257   :  { %v4825_v37 = vpop.f32.mrb[0].mxu0 }
 0x258   :  { %330 = vrot.lane.b32.xlu1 %v4825_v37, %s4618_s2  ;;  %v4829_v38 = vpop.f32.mrb[1].mxu0 }
 0x259   :  { %252 = vrot.lane.b32.xlu0 %v4829_v38, %s4618_s2 }
 0x2ca   :  { %v331_v40 = vpop.permute.xlu1 %330 }
 0x2cb   :  { %v253_v39 = vpop.permute.xlu0 %252 }
 0x2cc   :  { %4060 = vmatpush3.xpose.msk.msra.mxu1 %vm254_vm2, %v253_v39 }
 0x2cd   :  { %4064 = vmatprep.subr.mxu1 %v4616_v36 }
 0x2cf   :  { %4062 = vmatmul.mubr.msk.f32.vlgmr.msra.gmra.mrb[0].mxu1 %vm254_vm2, %v4829_v38 }
 0x2d0   :  { %4065 = vmatpush3.xpose.msk.msra.mxu1 %vm254_vm2, %v331_v40  ;;  %4066 = vmatprep.mubr.msk.f32.mxu1 %vm4617_vm1, %v4616_v36 }
 0x2d1   :  { %4069 = vmatprep.subr.mxu1 %v4616_v36 }
 0x2d3   :  { %4067 = vmatmul.mubr.msk.f32.vlgmr.msra.gmra.mrb[2].mxu1 %vm254_vm2, %v4825_v37 }
 0x2d4   :  { %4071 = vmatprep.mubr.msk.f32.mxu1 %vm4617_vm1, %v4616_v36 }
 0x3a2   :  { %v325_v41 = vpop.f32.mrb[0].mxu1 }
 0x3a3   :  { %v406_v43 = vmul.f32 0.35355338, %v325_v41  ;;  %v4063_v44 = vpop.f32.mrb[1].mxu1 }
 0x3a5   :  { %v408_v45 = vadd.f32 %v406_v43, %v4845_v42 }
 0x3a6   :  { %v402_v46 = vpop.f32.mrb[2].mxu1 }
 0x3a7   :  { %v407_v47 = vmul.f32 0.35355338, %v402_v46  ;;  %v4068_v48 = vpop.f32.mrb[3].mxu1  ;;  %v410_v49 = vsel %vm254_vm2, %v408_v45, -inf }
 0x3a8   :  { %411 = vmax.xlane.f32.xlu1 %v410_v49 }
 0x3a9   :  { %v409_v50 = vadd.f32 %v407_v47, %v4845_v42 }
 0x3ab   :  { %v413_v51 = vsel %vm254_vm2, %v409_v50, -inf }
 0x3ac   :  { %414 = vmax.xlane.f32.xlu0 %v413_v51 }
 0x3b9   :  { %508 = vrot.lane.b32.xlu1 %v4825_v37, %s4619_s3 }
 0x3bd   :  { %586 = vrot.lane.b32.xlu1 %v4829_v38, %s4620_s1 }
 0x3c1   :  { %664 = vrot.lane.b32.xlu1 %v4825_v37, %s4620_s1 }
 0x435   :  { %v412_v52 = vpop.xlane.xlu1 %411 }
 0x436   :  { %v416_v53 = vsub.f32 %v408_v45, %v412_v52 }
 0x438   :  { %v418_v54 = vmul.f32 1.442695, %v416_v53 }
 0x439   :  { %v509_v55 = vpop.permute.xlu1 %508  ;;  %v415_v56 = vpop.xlane.xlu0 %414 }
 0x43a   :  { %4436 = vpow2.f32 %v418_v54  ;;  %v417_v57 = vsub.f32 %v409_v50, %v415_v56 }
 0x43c   :  { %v420_v58 = vmul.f32 1.442695, %v417_v57 }
 0x43d   :  { %v587_v59 = vpop.permute.xlu1 %586 }
 0x43e   :  { %4438 = vpow2.f32 %v420_v58  ;;  %4080 = vmatpush3.xpose.msk.msra.mxu0 %vm254_vm2, %v587_v59 }
 0x43f   :  { %4089 = vmatprep.subr.mxu0 %v4616_v36 }
 0x441   :  { %v665_v2 = vpop.permute.xlu1 %664 }
 0x444   :  { %v4437_v60 = vpop.eup %4436 }
 0x445   :  { %v422_v61 = vsel %vm254_vm2, %v4437_v60, 0.0 }
 0x446   :  { %423 = vadd.xlane.f32.xlu0 %v422_v61 }
 0x448   :  { %v4439_v62 = vpop.eup %4438 }
 0x449   :  { %v425_v63 = vsel %vm254_vm2, %v4439_v62, 0.0 }
 0x44a   :  { %426 = vadd.xlane.f32.xlu1 %v425_v63 }
 0x45b   :  { %662 = vrot.lane.b32.xlu1 %v4825_v37, %s4621_s20 }
 0x45c   :  { %432 = vrot.lane.b32.xlu0 %v4829_v38, %s4619_s3 }
 0x460   :  { %584 = vrot.lane.b32.xlu0 %v4829_v38, %s4621_s20 }
 0x4d3   :  { %v424_v3 = vpop.xlane.xlu0 %423 }
 0x4d4   :  { %4440 = vrcp.f32 %v424_v3 }
 0x4d7   :  { %v427_v4 = vpop.xlane.xlu1 %426  ;;  %v433_v5 = vpop.permute.xlu0 %432 }
 0x4d8   :  { %4442 = vrcp.f32 %v427_v4  ;;  %4070 = vmatpush3.msra.mxu1 %v433_v5 }
 0x4d9   :  { %4074 = vmatprep.subr.mxu1 %v4616_v36 }
 0x4db   :  { %v585_v6 = vpop.permute.xlu0 %584  ;;  %v663_v11 = vpop.permute.xlu1 %662 }
 0x4dc   :  { %4082 = vmatmul.mubr.msk.f32.vlgmr.msra.gmra.mrb[2].mxu0 %vm254_vm2, %v585_v6 }
 0x4dd   :  { %4091 = vmatprep.mubr.msk.f32.mxu0 %vm4617_vm1, %v4616_v36 }
 0x4de   :  { %v4441_v7 = vpop.eup %4440 }
 0x4df   :  { %v430_v8 = vmul.f32 %v4441_v7, %v4437_v60 }
 0x4e1   :  { %4072 = vmatmul.mubr.msk.f32.vlgmr.msra.gmra.mrb[4].mxu1 %vm254_vm2, %v430_v8 }
 0x4e2   :  { %v4443_v9 = vpop.eup %4442  ;;  %4075 = vmatpush3.msra.mxu1 %v509_v55  ;;  %4076 = vmatprep.mubr.msk.f32.mxu1 %vm4617_vm1, %v4616_v36 }
 0x4e3   :  { %v431_v10 = vmul.f32 %v4443_v9, %v4439_v62  ;;  %4084 = vmatprep.subr.mxu1 %v4616_v36 }
 0x4e5   :  { %4077 = vmatmul.mubr.msk.f32.vlgmr.msra.gmra.mrb[6].mxu1 %vm254_vm2, %v431_v10 }
 0x4e6   :  { %4086 = vmatprep.mubr.msk.f32.mxu1 %vm4617_vm1, %v4616_v36 }
 0x4e9   :  { %4085 = vmatpush3.xpose.msk.msra.mxu1 %vm254_vm2, %v665_v2 }
 0x4ea   :  { %4094 = vmatprep.subr.mxu1 %v4616_v36 }
 0x4ec   :  { %4087 = vmatmul.mubr.msk.f32.vlgmr.msra.gmra.mrb[8].mxu1 %vm254_vm2, %v663_v11 }
 0x4ed   :  { %4096 = vmatprep.mubr.msk.f32.mxu1 %vm4617_vm1, %v4616_v36 }
 0x5af   :  { %v658_v12 = vpop.f32.mrb[2].mxu0 }
 0x5b0   :  { %v740_v13 = vmul.f32 0.35355338, %v658_v12  ;;  %v4083_v14 = vpop.f32.mrb[3].mxu0 }
 0x5b2   :  { %v742_v15 = vadd.f32 %v740_v13, %v4845_v42 }
 0x5b4   :  { %v4884_v16 = vpop.f32.mrb[4].mxu1  ;;  %v744_v18 = vsel %vm254_vm2, %v742_v15, -inf }
 0x5b5   :  { %745 = vmax.xlane.f32.xlu0 %v744_v18  ;;  %v4073_v20 = vpop.f32.mrb[5].mxu1 }
 0x5b8   :  { %v4887_v21 = vpop.f32.mrb[6].mxu1 }
 0x5b9   :  { %v4078_v22 = vpop.f32.mrb[7].mxu1 }
 0x5bf   :  { %v736_v23 = vpop.f32.mrb[8].mxu1 }
 0x5c0   :  { %v741_v24 = vmul.f32 0.35355338, %v736_v23  ;;  %v4088_v25 = vpop.f32.mrb[9].mxu1 }
 0x5c2   :  { %v743_v26 = vadd.f32 %v741_v24, %v4845_v42 }
 0x5c4   :  { %v747_v28 = vsel %vm254_vm2, %v743_v26, -inf }
 0x5c5   :  { %748 = vmax.xlane.f32.xlu1 %v747_v28 }
 0x5d6   :  { %842 = vrot.lane.b32.xlu1 %v4825_v37, %s4622_s27 }
 0x5da   :  { %920 = vrot.lane.b32.xlu1 %v4829_v38, %s4623_s28 }
 0x5de   :  { %998 = vrot.lane.b32.xlu1 %v4825_v37, %s4623_s28 }
 0x5e2   :  { %996 = vrot.lane.b32.xlu1 %v4825_v37, %s4624_s15 }
 0x642   :  { %v746_v30 = vpop.xlane.xlu0 %745 }
 0x643   :  { %v750_v31 = vsub.f32 %v742_v15, %v746_v30 }
 0x645   :  { %v752_v32 = vmul.f32 1.442695, %v750_v31 }
 0x647   :  { %4444 = vpow2.f32 %v752_v32 }
 0x651   :  { %v4445_v33 = vpop.eup %4444 }
 0x652   :  { %v749_v34 = vpop.xlane.xlu1 %748  ;;  %v756_v35 = vsel %vm254_vm2, %v4445_v33, 0.0 }
 0x653   :  { %757 = vadd.xlane.f32.xlu0 %v756_v35  ;;  %v751_v40 = vsub.f32 %v743_v26, %v749_v34 }
 0x655   :  { %v754_v41 = vmul.f32 1.442695, %v751_v40 }
 0x656   :  { %v843_v39 = vpop.permute.xlu1 %842 }
 0x657   :  { %4095 = vmatpush3.msra.mxu1 %v843_v39  ;;  %4446 = vpow2.f32 %v754_v41 }
 0x658   :  { %4104 = vmatprep.subr.mxu1 %v4616_v36 }
 0x65a   :  { %v921_v49 = vpop.permute.xlu1 %920 }
 0x65e   :  { %v999_v53 = vpop.permute.xlu1 %998 }
 0x661   :  { %v4447_v43 = vpop.eup %4446 }
 0x662   :  { %v759_v44 = vsel %vm254_vm2, %v4447_v43, 0.0  ;;  %v997_v55 = vpop.permute.xlu1 %996 }
 0x669   :  { %766 = vrot.lane.b32.xlu0 %v4829_v38, %s4622_s27 }
 0x688   :  { %760 = vadd.xlane.f32.xlu0 %v759_v44 }
 0x69e   :  { %918 = vrot.lane.b32.xlu0 %v4829_v38, %s4624_s15 }
 0x6e0   :  { %v758_v45 = vpop.xlane.xlu0 %757 }
 0x6e1   :  { %4448 = vrcp.f32 %v758_v45 }
 0x6e4   :  { %v767_v46 = vpop.permute.xlu0 %766 }
 0x6e5   :  { %4090 = vmatpush3.msra.mxu0 %v767_v46 }
 0x6e6   :  { %4099 = vmatprep.subr.mxu0 %v4616_v36 }
 0x6eb   :  { %v4449_v47 = vpop.eup %4448 }
 0x6ec   :  { %v764_v48 = vmul.f32 %v4449_v47, %v4445_v33 }
 0x6ee   :  { %4092 = vmatmul.mubr.msk.f32.vlgmr.msra.gmra.mrb[4].mxu0 %vm254_vm2, %v764_v48 }
 0x6ef   :  { %4100 = vmatpush3.xpose.msk.msra.mxu0 %vm254_vm2, %v921_v49  ;;  %4101 = vmatprep.mubr.msk.f32.mxu0 %vm4617_vm1, %v4616_v36 }
 0x6f0   :  { %4109 = vmatprep.subr.mxu0 %v4616_v36 }
 0x715   :  { %v761_v50 = vpop.xlane.xlu0 %760 }
 0x716   :  { %4450 = vrcp.f32 %v761_v50 }
 0x719   :  { %v919_v51 = vpop.permute.xlu0 %918 }
 0x71a   :  { %4102 = vmatmul.mubr.msk.f32.vlgmr.msra.gmra.mrb[6].mxu0 %vm254_vm2, %v919_v51 }
 0x71b   :  { %4111 = vmatprep.mubr.msk.f32.mxu0 %vm4617_vm1, %v4616_v36 }
 0x720   :  { %v4451_v52 = vpop.eup %4450 }
 0x721   :  { %v765_v54 = vmul.f32 %v4451_v52, %v4447_v43 }
 0x723   :  { %4097 = vmatmul.mubr.msk.f32.vlgmr.msra.gmra.mrb[10].mxu1 %vm254_vm2, %v765_v54 }
 0x724   :  { %4105 = vmatpush3.xpose.msk.msra.mxu1 %vm254_vm2, %v999_v53  ;;  %4106 = vmatprep.mubr.msk.f32.mxu1 %vm4617_vm1, %v4616_v36 }
 0x725   :  { %4114 = vmatprep.subr.mxu1 %v4616_v36 }
 0x727   :  { %4107 = vmatmul.mubr.msk.f32.vlgmr.msra.gmra.mrb[12].mxu1 %vm254_vm2, %v997_v55 }
 0x728   :  { %4116 = vmatprep.mubr.msk.f32.mxu1 %vm4617_vm1, %v4616_v36 }
 0x7c1   :  { %v4923_v56 = vpop.f32.mrb[4].mxu0 }
 0x7c2   :  { %v4093_v57 = vpop.f32.mrb[5].mxu0 }
 0x7ed   :  { %v992_v58 = vpop.f32.mrb[6].mxu0 }
 0x7ee   :  { %v1074_v59 = vmul.f32 0.35355338, %v992_v58  ;;  %v4103_v60 = vpop.f32.mrb[7].mxu0 }
 0x7f0   :  { %v1076_v61 = vadd.f32 %v1074_v59, %v4845_v42 }
 0x7f2   :  { %v1078_v62 = vsel %vm254_vm2, %v1076_v61, -inf }
 0x7f3   :  { %1079 = vmax.xlane.f32.xlu0 %v1078_v62 }
 0x7f6   :  { %v4927_v63 = vpop.f32.mrb[10].mxu1 }
 0x7f7   :  { %v4098_v2 = vpop.f32.mrb[11].mxu1 }
 0x7fa   :  { %v1070_v3 = vpop.f32.mrb[12].mxu1 }
 0x7fb   :  { %v1075_v4 = vmul.f32 0.35355338, %v1070_v3  ;;  %v4108_v5 = vpop.f32.mrb[13].mxu1 }
 0x7fd   :  { %v1077_v6 = vadd.f32 %v1075_v4, %v4845_v42 }
 0x7ff   :  { %v1081_v7 = vsel %vm254_vm2, %v1077_v6, -inf }
 0x800   :  { %1082 = vmax.xlane.f32.xlu1 %v1081_v7 }
 0x811   :  { %1176 = vrot.lane.b32.xlu1 %v4825_v37, %s4625_s17 }
 0x815   :  { %1254 = vrot.lane.b32.xlu1 %v4829_v38, %s4626_s21 }
 0x819   :  { %1332 = vrot.lane.b32.xlu1 %v4825_v37, %s4626_s21 }
 0x81d   :  { %1330 = vrot.lane.b32.xlu1 %v4825_v37, %s4627_s22 }
 0x880   :  { %v1080_v8 = vpop.xlane.xlu0 %1079 }
 0x881   :  { %v1084_v9 = vsub.f32 %v1076_v61, %v1080_v8 }
 0x883   :  { %v1086_v10 = vmul.f32 1.442695, %v1084_v9  ;;  %v104_v9 = vld [vmem:[%s5397_s5 + $0x8] sm:$0xff] }
 0x885   :  { %4452 = vpow2.f32 %v1086_v10 }
 0x88d   :  { %v1083_v11 = vpop.xlane.xlu1 %1082 }
 0x88e   :  { %v1085_v15 = vsub.f32 %v1077_v6, %v1083_v11  ;;  %v105_v11 = vld [vmem:[%s5397_s5 + $0x10] sm:$0xff] }
 0x88f   :  { %v4453_v12 = vpop.eup %4452 }
 0x890   :  { %v1090_v13 = vsel %vm254_vm2, %v4453_v12, 0.0  ;;  %v1088_v18 = vmul.f32 1.442695, %v1085_v15 }
 0x891   :  { %1091 = vadd.xlane.f32.xlu0 %v1090_v13  ;;  %v1177_v14 = vpop.permute.xlu1 %1176 }
 0x892   :  { %4115 = vmatpush3.msra.mxu1 %v1177_v14  ;;  %4454 = vpow2.f32 %v1088_v18 }
 0x893   :  { %4124 = vmatprep.subr.mxu1 %v4616_v36 }
 0x895   :  { %v1255_v28 = vpop.permute.xlu1 %1254 }
 0x899   :  { %v1333_v33 = vpop.permute.xlu1 %1332 }
 0x89c   :  { %v4455_v20 = vpop.eup %4454 }
 0x89d   :  { %v1093_v22 = vsel %vm254_vm2, %v4455_v20, 0.0  ;;  %v1331_v35 = vpop.permute.xlu1 %1330 }
 0x8a7   :  { %1100 = vrot.lane.b32.xlu0 %v4829_v38, %s4625_s17 }
 0x8c6   :  { %1094 = vadd.xlane.f32.xlu0 %v1093_v22 }
 0x8dc   :  { %1252 = vrot.lane.b32.xlu0 %v4829_v38, %s4627_s22 }
 0x91e   :  { %v1092_v23 = vpop.xlane.xlu0 %1091 }
 0x91f   :  { %4456 = vrcp.f32 %v1092_v23 }
 0x922   :  { %v1101_v24 = vpop.permute.xlu0 %1100 }
 0x923   :  { %4110 = vmatpush3.msra.mxu0 %v1101_v24 }
 0x924   :  { %4119 = vmatprep.subr.mxu0 %v4616_v36 }
 0x929   :  { %v4457_v25 = vpop.eup %4456 }
 0x92a   :  { %v1098_v26 = vmul.f32 %v4457_v25, %v4453_v12  ;;  %v106_v12 = vld [vmem:[%s5397_s5 + $0x18] sm:$0xff] }
 0x92b   :  { %v4996_v13 = vpack.c.bf16 %v106_v12, %v105_v11 }
 0x92c   :  { %4112 = vmatmul.mubr.msk.f32.vlgmr.msra.gmra.mrb[8].mxu0 %vm254_vm2, %v1098_v26 }
 0x92d   :  { %4120 = vmatpush3.xpose.msk.msra.mxu0 %vm254_vm2, %v1255_v28  ;;  %4121 = vmatprep.mubr.msk.f32.mxu0 %vm4617_vm1, %v4616_v36 }
 0x92e   :  { %4129 = vmatprep.subr.mxu0 %v4616_v36 }
 0x953   :  { %v1095_v30 = vpop.xlane.xlu0 %1094 }
 0x954   :  { %4458 = vrcp.f32 %v1095_v30 }
 0x957   :  { %v1253_v31 = vpop.permute.xlu0 %1252 }
 0x958   :  { %4122 = vmatmul.mubr.msk.f32.vlgmr.msra.gmra.mrb[10].mxu0 %vm254_vm2, %v1253_v31 }
 0x959   :  { %4131 = vmatprep.mubr.msk.f32.mxu0 %vm4617_vm1, %v4616_v36 }
 0x95e   :  { %v4459_v32 = vpop.eup %4458 }
 0x95f   :  { %v1099_v34 = vmul.f32 %v4459_v32, %v4455_v20 }
 0x961   :  { %4117 = vmatmul.mubr.msk.f32.vlgmr.msra.gmra.mrb[14].mxu1 %vm254_vm2, %v1099_v34 }
 0x962   :  { %4125 = vmatpush3.xpose.msk.msra.mxu1 %vm254_vm2, %v1333_v33  ;;  %4126 = vmatprep.mubr.msk.f32.mxu1 %vm4617_vm1, %v4616_v36 }
 0x963   :  { %4134 = vmatprep.subr.mxu1 %v4616_v36 }
 0x965   :  { %4127 = vmatmul.mubr.msk.f32.vlgmr.msra.gmra.mrb[16].mxu1 %vm254_vm2, %v1331_v35 }
 0x966   :  { %4136 = vmatprep.mubr.msk.f32.mxu1 %vm4617_vm1, %v4616_v36 }
 0x9ff   :  { %v1172_v39 = vpop.f32.mrb[8].mxu0 }
 0xa00   :  { %v4113_v40 = vpop.f32.mrb[9].mxu0 }
 0xa2b   :  { %v1326_v41 = vpop.f32.mrb[10].mxu0 }
 0xa2c   :  { %v1408_v43 = vmul.f32 0.35355338, %v1326_v41  ;;  %v4123_v44 = vpop.f32.mrb[11].mxu0 }
 0xa2e   :  { %v1410_v45 = vadd.f32 %v1408_v43, %v4845_v42 }
 0xa30   :  { %v1412_v46 = vsel %vm254_vm2, %v1410_v45, -inf }
 0xa31   :  { %1413 = vmax.xlane.f32.xlu0 %v1412_v46 }
 0xa34   :  { %v1248_v47 = vpop.f32.mrb[14].mxu1 }
 0xa35   :  { %v4118_v48 = vpop.f32.mrb[15].mxu1 }
 0xa38   :  { %v1404_v49 = vpop.f32.mrb[16].mxu1 }
 0xa39   :  { %v1409_v50 = vmul.f32 0.35355338, %v1404_v49  ;;  %v4128_v51 = vpop.f32.mrb[17].mxu1 }
 0xa3b   :  { %v1411_v52 = vadd.f32 %v1409_v50, %v4845_v42 }
 0xa3d   :  { %v1415_v53 = vsel %vm254_vm2, %v1411_v52, -inf }
 0xa3e   :  { %1416 = vmax.xlane.f32.xlu1 %v1415_v53 }
 0xa4f   :  { %1510 = vrot.lane.b32.xlu1 %v4825_v37, %s4628_s23 }
 0xa53   :  { %1588 = vrot.lane.b32.xlu1 %v4923_v56, %s4614_s0 }
 0xa57   :  { %1590 = vrot.lane.b32.xlu1 %v4927_v63, %s4614_s0 }
 0xa5b   :  { %1598 = vrot.lane.b32.xlu1 %v1248_v47, %s5414_s24 }
 0xabe   :  { %v1414_v54 = vpop.xlane.xlu0 %1413 }
 0xabf   :  { %v1418_v55 = vsub.f32 %v1410_v45, %v1414_v54 }
 0xac1   :  { %v1420_v57 = vmul.f32 1.442695, %v1418_v55  ;;  %v108_v55 = vld [vmem:[%s5401_s9] sm:$0xff] }
 0xac3   :  { %4460 = vpow2.f32 %v1420_v57  ;;  %v109_v57 = vld [vmem:[%s5401_s9 + $0x8] sm:$0xff] }
 0xacb   :  { %v1417_v58 = vpop.xlane.xlu1 %1416 }
 0xacc   :  { %v1419_v59 = vsub.f32 %v1411_v52, %v1417_v58  ;;  %v5040_v58 = vpack.c.bf16 %v109_v57, %v108_v55 }
 0xacd   :  { %v4461_v60 = vpop.eup %4460 }
 0xace   :  { %v1422_v61 = vmul.f32 1.442695, %v1419_v59  ;;  %v1424_v62 = vsel %vm254_vm2, %v4461_v60, 0.0  ;;  %v110_v59 = vld [vmem:[%s5401_s9 + $0x10] sm:$0xff] }
 0xacf   :  { %1425 = vadd.xlane.f32.xlu0 %v1424_v62  ;;  %v1511_v37 = vpop.permute.xlu1 %1510  ;;  %v113_v62 = vld [vmem:[%s5403_s11] sm:$0xff] }
 0xad0   :  { %4462 = vpow2.f32 %v1422_v61  ;;  %4135 = vmatpush3.msra.mxu1 %v1511_v37  ;;  %v114_v37 = vld [vmem:[%s5403_s11 + $0x8] sm:$0xff] }
 0xad1   :  { %4340 = vmatprep.subr.bf16.mxu1 %v5040_v58 }
 0xad3   :  { %v1589_v22 = vpop.permute.xlu1 %1588 }
 0xad4   :  { %v1610_v25 = vsel %vm254_vm2, %v4884_v16, %v1589_v22  ;;  %v5016_v16 = vld [vmem:[%s5398_s6] ss:$0 sm:$0xff] }
 0xad7   :  { %v1591_v24 = vpop.permute.xlu1 %1590 }
 0xad8   :  { %v1611_v32 = vsel %vm254_vm2, %v4887_v21, %v1591_v24 }
 0xada   :  { %v4463_v56 = vpop.eup %4462 }
 0xadb   :  { %v1427_v63 = vsel %vm254_vm2, %v4463_v56, 0.0  ;;  %v1599_v31 = vpop.permute.xlu1 %1598 }
 0xadc   :  { %1428 = vadd.xlane.f32.xlu0 %v1427_v63  ;;  %v1614_v33 = vsel %vm1612_vm4, %v1611_v32, %v1599_v31  ;;  %v5064_v63 = vpack.c.bf16 %v114_v37, %v113_v62  ;;  %v120_v31 = vld [vmem:[%s5403_s11 + $0x38] sm:$0xff] }
 0xaf2   :  { %1434 = vrot.lane.b32.xlu0 %v4829_v38, %s4628_s23  ;;  %v103_v38 = vld [vmem:[%s5397_s5] sm:$0xff] }
 0xaf3   :  { %v4987_v10 = vpack.c.bf16 %v104_v9, %v103_v38 }
 0xaf6   :  { %1596 = vrot.lane.b32.xlu0 %v1172_v39, %s5414_s24 }
 0xb5c   :  { %v1426_v2 = vpop.xlane.xlu0 %1425 }
 0xb5d   :  { %4464 = vrcp.f32 %v1426_v2  ;;  %v116_v2 = vld [vmem:[%s5403_s11 + $0x18] sm:$0xff] }
 0xb67   :  { %v4465_v4 = vpop.eup %4464 }
 0xb68   :  { %v1432_v5 = vmul.f32 %v4465_v4, %v4461_v60  ;;  %v111_v60 = vld [vmem:[%s5401_s9 + $0x18] sm:$0xff]  ;;  %v117_v4 = vld [vmem:[%s5403_s11 + $0x20] sm:$0xff] }
 0xb69   :  { %v1429_v3 = vpop.xlane.xlu0 %1428  ;;  %v5050_v61 = vpack.c.bf16 %v111_v60, %v110_v59 }
 0xb6a   :  { %4466 = vrcp.f32 %v1429_v3 }
 0xb6d   :  { %v1435_v6 = vpop.permute.xlu0 %1434 }
 0xb6e   :  { %4130 = vmatpush3.msra.mxu0 %v1435_v6 }
 0xb6f   :  { %4132 = vmatmul.mubr.msk.f32.vlgmr.msra.gmra.mrb[12].mxu0 %vm254_vm2, %v1432_v5  ;;  %4332 = vmatprep.subr.bf16.mxu0 %v4987_v10  ;;  %v118_v5 = vld [vmem:[%s5403_s11 + $0x28] sm:$0xff] }
 0xb70   :  { %4334 = vmatpush3.bf16.msra.mxu0 %v4987_v10  ;;  %v5080_v6 = vpack.c.bf16 %v118_v5, %v117_v4 }
 0xb71   :  { %4336 = vmatprep.subr.bf16.mxu0 %v4996_v13  ;;  %v1597_v23 = vpop.permute.xlu0 %1596 }
 0xb72   :  { %v1613_v26 = vsel %vm1612_vm4, %v1610_v25, %v1597_v23 }
 0xb74   :  { %v4467_v7 = vpop.eup %4466  ;;  %4338 = vmatpush3.bf16.msra.mxu0 %v4996_v13 }
 0xb75   :  { %v1433_v8 = vmul.f32 %v4467_v7, %v4463_v56  ;;  %v115_v56 = vld [vmem:[%s5403_s11 + $0x10] sm:$0xff]  ;;  %4348 = vmatprep.subr.bf16.mxu0 %v5064_v63 }
 0xb76   :  { %v5069_v3 = vpack.c.bf16 %v116_v2, %v115_v56 }
 0xb77   :  { %4137 = vmatmul.mubr.msk.f32.vlgmr.msra.gmra.mrb[18].mxu1 %vm254_vm2, %v1433_v8 }
 0xb78   :  { %4342 = vmatpush3.bf16.msra.mxu1 %v5040_v58 }
 0xb79   :  { %4344 = vmatprep.subr.bf16.mxu1 %v5050_v61 }
 0xb7c   :  { %4346 = vmatpush3.bf16.msra.mxu1 %v5050_v61 }
 0xb7d   :  { %4364 = vmatprep.subr.bf16.mxu1 %v4792_v17 }
 0xc42   :  { %v1506_v14 = vpop.f32.mrb[12].mxu0 }
 0xc43   :  { %1604 = vrot.lane.b32.xlu0 %v1506_v14, %s4630_s26  ;;  %v4133_v15 = vpop.f32.mrb[13].mxu0 }
 0xc44   :  { %v5088_v15 = vld [vmem:[%s5399_s7] ss:$0 sm:$0xff] }
 0xc4a   :  { %v1582_v18 = vpop.f32.mrb[18].mxu1 }
 0xc4b   :  { %1606 = vrot.lane.b32.xlu1 %v1582_v18, %s4630_s26  ;;  %v4138_v20 = vpop.f32.mrb[19].mxu1 }
 0xc4c   :  { %v5093_v20 = vld [vmem:[%s5400_s8] ss:$0 sm:$0xff] }
 0xcb5   :  { %v1605_v28 = vpop.permute.xlu0 %1604 }
 0xcb6   :  { %v1616_v30 = vsel %vm1615_vm3, %v1613_v26, %v1605_v28 }
 0xcb7   :  { %4147 = vmatprep.mubr.msk.f32.mxu0 %vm126_vm0, %v1616_v30  ;;  %v119_v30 = vld [vmem:[%s5403_s11 + $0x30] sm:$0xff] }
 0xcb8   :  { %v5111_v32 = vpack.c.bf16 %v120_v31, %v119_v30 }
 0xcbd   :  { %v1607_v34 = vpop.permute.xlu1 %1606 }
 0xcbe   :  { %v1617_v35 = vsel %vm1615_vm3, %v1614_v33, %v1607_v34 }
 0xcbf   :  { %4148 = vmatmul.mubr.msk.f32.vlgmr.msra.gmra.mrb[14].mxu0 %vm126_vm0, %v1617_v35 }
 0xcc0   :  { %4350 = vmatpush3.bf16.msra.mxu0 %v5064_v63 }
 0xcc1   :  { %4352 = vmatprep.subr.bf16.mxu0 %v5069_v3 }
 0xcc4   :  { %4354 = vmatpush3.bf16.msra.mxu0 %v5069_v3 }
 0xcc5   :  { %4356 = vmatprep.subr.bf16.mxu0 %v5080_v6 }
 0xcc8   :  { %4358 = vmatpush3.bf16.msra.mxu0 %v5080_v6 }
 0xcc9   :  { %4360 = vmatprep.subr.bf16.mxu0 %v5111_v32 }
 0xccc   :  { %4362 = vmatpush3.bf16.msra.mxu0 %v5111_v32 }
 0xccd   :  { %4201 = vmatprep.subr.mxu0 %v4616_v36 }
 0xd92   :  { %v4149_v39 = vpop.f32.mrb[14].mxu0 }
 0xd93   :  { %v1700_v40 = vadd.f32 %v4149_v39, %v4773_v1  ;;  %v1690_v41 = vpop.f32.mrb[15].mxu0 }
 0xd94   :  { %v1699_v43 = vadd.f32 %v1690_v41, %v4771_v0  ;;  %v5130_v41 = vld [vmem:[%s5404_s12] ss:$0 sm:$0xff] }
 0xd95   :  { %v5021_v21 = vadd.f32 %v5016_v16, %v1700_v40 }
 0xd96   :  { %v5024_v44 = vadd.f32 %v5016_v16, %v1699_v43 }
 0xd97   :  { %v1712_v45 = vsel %vm126_vm0, %v5021_v21, 0.0 }
 0xd98   :  { %1713 = vadd.xlane.f32.xlu1 %v1712_v45  ;;  %v1709_v46 = vsel %vm126_vm0, %v5024_v44, 0.0 }
 0xd99   :  { %1710 = vadd.xlane.f32.xlu0 %v1709_v46 }
 0xe25   :  { %v1714_v47 = vpop.xlane.xlu1 %1713 }
 0xe26   :  { %v1716_v48 = vmul.f32 0.03125, %v1714_v47  ;;  %v1711_v1 = vpop.xlane.xlu0 %1710 }
 0xe27   :  { %v1715_v49 = vmul.f32 0.03125, %v1711_v1 }
 0xe28   :  { %v1718_v0 = vsub.f32 %v5021_v21, %v1716_v48 }
 0xe29   :  { %v1717_v50 = vsub.f32 %v5024_v44, %v1715_v49 }
 0xe2a   :  { %v1720_v53 = vmul.f32 %v1718_v0, %v1718_v0 }
 0xe2b   :  { %v1719_v51 = vmul.f32 %v1717_v50, %v1717_v50 }
 0xe2c   :  { %v1724_v54 = vsel %vm126_vm0, %v1720_v53, 0.0 }
 0xe2d   :  { %v1721_v52 = vsel %vm126_vm0, %v1719_v51, 0.0 }
 0xe2e   :  { %1722 = vadd.xlane.f32.xlu0 %v1721_v52 }
 0xe32   :  { %1725 = vadd.xlane.f32.xlu0 %v1724_v54 }
 0xebb   :  { %v1723_v7 = vpop.xlane.xlu0 %1722 }
 0xebc   :  { %v1727_v8 = vmul.f32 0.03125, %v1723_v7 }
 0xebe   :  { %v1729_v38 = vadd.f32 1e-05, %v1727_v8 }
 0xebf   :  { %v1726_v9 = vpop.xlane.xlu0 %1725 }
 0xec0   :  { %4468 = vrsqrt.f32 %v1729_v38  ;;  %v1728_v11 = vmul.f32 0.03125, %v1726_v9 }
 0xec2   :  { %v1730_v12 = vadd.f32 1e-05, %v1728_v11 }
 0xec4   :  { %4470 = vrsqrt.f32 %v1730_v12 }
 0xeca   :  { %v4469_v14 = vpop.eup %4468 }
 0xecb   :  { %v1733_v18 = vmul.f32 %v4469_v14, %v1717_v50 }
 0xecd   :  { %v1741_v22 = vmul.f32 %v5088_v15, %v1733_v18 }
 0xece   :  { %v4471_v23 = vpop.eup %4470 }
 0xecf   :  { %v1734_v24 = vmul.f32 %v4471_v23, %v1718_v0  ;;  %v1749_v25 = vadd.f32 %v5093_v20, %v1741_v22 }
 0xed1   :  { %4158 = vmatprep.mubr.msk.f32.mxu1 %vm126_vm0, %v1749_v25  ;;  %v1742_v26 = vmul.f32 %v5088_v15, %v1734_v24 }
 0xed3   :  { %v1750_v28 = vadd.f32 %v5093_v20, %v1742_v26 }
 0xed5   :  { %4159 = vmatmul.mubr.msk.f32.vlgmr.msra.gmra.mrb[20].mxu1 %vm126_vm0, %v1750_v28 }
 0xed6   :  { %4366 = vmatpush3.bf16.msra.mxu1 %v4792_v17  ;;  %v5119_v17 = vld [vmem:[%s5402_s10] ss:$0 sm:$0xff]  ;;  %s5421_s10 = smov 16  }
 0xed7   :  { %4368 = vmatprep.subr.bf16.mxu1 %v4797_v19 }
 0xeda   :  { %4370 = vmatpush3.bf16.msra.mxu1 %v4797_v19 }
 0xedb   :  { %4191 = vmatprep.subr.mxu1 %v4616_v36 }
 0xfa8   :  { %v4160_v19 = vpop.f32.mrb[20].mxu1 }
 0xfa9   :  { %v1835_v33 = vadd.f32 %v4160_v19, %v5119_v17  ;;  %v1829_v34 = vpop.f32.mrb[21].mxu1 }
 0xfaa   :  { %v1830_v35 = vadd.f32 %v5119_v17, %v1829_v34 }
 0xfab   :  { %v1839_v40 = vmax.f32 %v1835_v33, 0.0 }
 0xfac   :  { %v1838_v39 = vmax.f32 %v1830_v35, 0.0 }
 0xfae   :  { %4177 = vmatprep.mubr.msk.f32.mxu0 %vm1840_vm5, %v1838_v39 }
 0xfaf   :  { %4178 = vmatmul.mubr.msk.f32.vlgmr.msra.gmra.mrb[16].mxu0 %vm1840_vm5, %v1839_v40 }
 0xfb0   :  { %4203 = vmatprep.mubr.msk.f32.mxu0 %vm4617_vm1, %v4616_v36 }
0x1082   :  { %v4179_v43 = vpop.f32.mrb[16].mxu0 }
0x1083   :  { %v1923_v45 = vadd.f32 %v4179_v43, %v5021_v21  ;;  %v1913_v46 = vpop.f32.mrb[17].mxu0 }
0x1084   :  { %v1922_v47 = vadd.f32 %v1913_v46, %v5024_v44 }
0x1085   :  { %v5135_v48 = vadd.f32 %v5130_v41, %v1923_v45 }
0x1086   :  { %v5138_v1 = vadd.f32 %v5130_v41, %v1922_v47 }
0x1087   :  { %v1935_v49 = vsel %vm126_vm0, %v5135_v48, 0.0 }
0x1088   :  { %1936 = vadd.xlane.f32.xlu1 %v1935_v49  ;;  %v1932_v0 = vsel %vm126_vm0, %v5138_v1, 0.0 }
0x1089   :  { %1933 = vadd.xlane.f32.xlu0 %v1932_v0 }
0x1115   :  { %v1937_v50 = vpop.xlane.xlu1 %1936 }
0x1116   :  { %v1939_v51 = vmul.f32 0.03125, %v1937_v50  ;;  %v1934_v21 = vpop.xlane.xlu0 %1933 }
0x1117   :  { %v1938_v52 = vmul.f32 0.03125, %v1934_v21 }
0x1118   :  { %v1941_v44 = vsub.f32 %v5135_v48, %v1939_v51 }
0x1119   :  { %v1940_v53 = vsub.f32 %v5138_v1, %v1938_v52 }
0x111a   :  { %v1943_v54 = vmul.f32 %v1941_v44, %v1941_v44 }
0x111b   :  { %v1942_v55 = vmul.f32 %v1940_v53, %v1940_v53 }
0x111c   :  { %v1947_v57 = vsel %vm126_vm0, %v1943_v54, 0.0 }
0x111d   :  { %1948 = vadd.xlane.f32.xlu1 %v1947_v57  ;;  %v1944_v59 = vsel %vm126_vm0, %v1942_v55, 0.0 }
0x111e   :  { %1945 = vadd.xlane.f32.xlu0 %v1944_v59 }
0x11aa   :  { %v1949_v60 = vpop.xlane.xlu1 %1948 }
0x11ab   :  { %v1951_v62 = vmul.f32 0.03125, %v1949_v60  ;;  %v1946_v37 = vpop.xlane.xlu0 %1945 }
0x11ac   :  { %v1950_v56 = vmul.f32 0.03125, %v1946_v37 }
0x11ad   :  { %v1953_v2 = vadd.f32 1e-05, %v1951_v62 }
0x11ae   :  { %v1952_v4 = vadd.f32 1e-05, %v1950_v56 }
0x11af   :  { %4472 = vrsqrt.f32 %v1953_v2 }
0x11b0   :  { %4474 = vrsqrt.f32 %v1952_v4 }
0x11b9   :  { %v4473_v5 = vpop.eup %4472 }
0x11ba   :  { %v4475_v7 = vpop.eup %4474  ;;  %v1957_v8 = vmul.f32 %v4473_v5, %v1941_v44 }
0x11bb   :  { %v1956_v38 = vmul.f32 %v4475_v7, %v1940_v53 }
0x11bc   :  { %v1959_v9 = vmul.f32 %v4806_v27, %v1957_v8 }
0x11bd   :  { %v1958_v11 = vmul.f32 %v4806_v27, %v1956_v38 }
0x11be   :  { %v1961_v14 = vadd.f32 %v4811_v29, %v1959_v9 }
0x11bf   :  { %v1960_v12 = vadd.f32 %v4811_v29, %v1958_v11 }
0x11c1   :  { %4188 = vmatprep.mubr.msk.f32.mxu1 %vm126_vm0, %v1960_v12 }
0x11c2   :  { %4189 = vmatmul.mubr.msk.f32.vlgmr.msra.gmra.mrb[22].mxu1 %vm126_vm0, %v1961_v14 }
0x11c3   :  { %4193 = vmatprep.mubr.msk.f32.mxu1 %vm4617_vm1, %v4616_v36 }
0x1295   :  { %v5156_v18 = vpop.f32.mrb[22].mxu1 }
0x1296   :  { %2121 = vrot.lane.b32.xlu1 %v5156_v18, %s4618_s2  ;;  %v5160_v22 = vpop.f32.mrb[23].mxu1 }
0x1297   :  { %2044 = vrot.lane.b32.xlu0 %v5160_v22, %s4618_s2 }
0x1308   :  { %v2122_v29 = vpop.permute.xlu1 %2121 }
0x1309   :  { %v2045_v27 = vpop.permute.xlu0 %2044 }
0x130a   :  { %4192 = vmatpush3.xpose.msk.msra.mxu1 %vm254_vm2, %v2045_v27 }
0x130b   :  { %4196 = vmatprep.subr.mxu1 %v4616_v36 }
0x130d   :  { %4194 = vmatmul.mubr.msk.f32.vlgmr.msra.gmra.mrb[24].mxu1 %vm254_vm2, %v5160_v22 }
0x130e   :  { %4197 = vmatpush3.xpose.msk.msra.mxu1 %vm254_vm2, %v2122_v29  ;;  %4198 = vmatprep.mubr.msk.f32.mxu1 %vm4617_vm1, %v4616_v36 }
0x130f   :  { %4206 = vmatprep.subr.mxu1 %v4616_v36 }
0x1311   :  { %4199 = vmatmul.mubr.msk.f32.vlgmr.msra.gmra.mrb[26].mxu1 %vm254_vm2, %v5156_v18 }
0x1312   :  { %4208 = vmatprep.mubr.msk.f32.mxu1 %vm4617_vm1, %v4616_v36 }
0x13e0   :  { %v2116_v23 = vpop.f32.mrb[24].mxu1 }
0x13e1   :  { %v2197_v24 = vmul.f32 0.35355338, %v2116_v23  ;;  %v4195_v25 = vpop.f32.mrb[25].mxu1 }
0x13e3   :  { %v2199_v26 = vadd.f32 %v2197_v24, %v4845_v42 }
0x13e4   :  { %v2193_v28 = vpop.f32.mrb[26].mxu1 }
0x13e5   :  { %v2198_v30 = vmul.f32 0.35355338, %v2193_v28  ;;  %v4200_v31 = vpop.f32.mrb[27].mxu1  ;;  %v2201_v19 = vsel %vm254_vm2, %v2199_v26, -inf }
0x13e6   :  { %2202 = vmax.xlane.f32.xlu1 %v2201_v19 }
0x13e7   :  { %v2200_v33 = vadd.f32 %v2198_v30, %v4845_v42 }
0x13e9   :  { %v2204_v34 = vsel %vm254_vm2, %v2200_v33, -inf }
0x13ea   :  { %2205 = vmax.xlane.f32.xlu0 %v2204_v34 }
0x13f7   :  { %2299 = vrot.lane.b32.xlu1 %v5156_v18, %s4619_s3 }
0x13fb   :  { %2377 = vrot.lane.b32.xlu1 %v5160_v22, %s4620_s1 }
0x13ff   :  { %2455 = vrot.lane.b32.xlu1 %v5156_v18, %s4620_s1 }
0x1400   :  { %2223 = vrot.lane.b32.xlu0 %v5160_v22, %s4619_s3 }
0x1473   :  { %v2203_v35 = vpop.xlane.xlu1 %2202 }
0x1474   :  { %v2207_v39 = vsub.f32 %v2199_v26, %v2203_v35 }
0x1476   :  { %v2209_v40 = vmul.f32 1.442695, %v2207_v39 }
0x1477   :  { %v2300_v43 = vpop.permute.xlu1 %2299  ;;  %v2206_v45 = vpop.xlane.xlu0 %2205 }
0x1478   :  { %4476 = vpow2.f32 %v2209_v40  ;;  %v2208_v46 = vsub.f32 %v2200_v33, %v2206_v45  ;;  %4207 = vmatpush3.msra.mxu1 %v2300_v43 }
0x1479   :  { %4216 = vmatprep.subr.mxu1 %v4616_v36 }
0x147a   :  { %v2211_v47 = vmul.f32 1.442695, %v2208_v46 }
0x147b   :  { %v2224_v49 = vpop.permute.xlu0 %2223  ;;  %v2378_v52 = vpop.permute.xlu1 %2377 }
0x147c   :  { %4478 = vpow2.f32 %v2211_v47  ;;  %4202 = vmatpush3.msra.mxu0 %v2224_v49 }
0x147d   :  { %4211 = vmatprep.subr.mxu0 %v4616_v36 }
0x147f   :  { %v2456_v44 = vpop.permute.xlu1 %2455 }
0x1482   :  { %v4477_v0 = vpop.eup %4476 }
0x1483   :  { %v2213_v50 = vsel %vm254_vm2, %v4477_v0, 0.0 }
0x1484   :  { %2214 = vadd.xlane.f32.xlu0 %v2213_v50 }
0x1486   :  { %v4479_v51 = vpop.eup %4478 }
0x1487   :  { %v2216_v21 = vsel %vm254_vm2, %v4479_v51, 0.0 }
0x1488   :  { %2217 = vadd.xlane.f32.xlu1 %v2216_v21 }
0x1499   :  { %2453 = vrot.lane.b32.xlu1 %v5156_v18, %s4621_s20 }
0x149a   :  { %2375 = vrot.lane.b32.xlu0 %v5160_v22, %s4621_s20 }
0x1511   :  { %v2215_v53 = vpop.xlane.xlu0 %2214 }
0x1512   :  { %4480 = vrcp.f32 %v2215_v53 }
0x1515   :  { %v2218_v54 = vpop.xlane.xlu1 %2217  ;;  %v2376_v62 = vpop.permute.xlu0 %2375 }
0x1516   :  { %4482 = vrcp.f32 %v2218_v54 }
0x1519   :  { %v2454_v37 = vpop.permute.xlu1 %2453 }
0x151c   :  { %v4481_v55 = vpop.eup %4480 }
0x151d   :  { %v2221_v57 = vmul.f32 %v4481_v55, %v4477_v0 }
0x151f   :  { %4204 = vmatmul.mubr.msk.f32.vlgmr.msra.gmra.mrb[18].mxu0 %vm254_vm2, %v2221_v57 }
0x1520   :  { %v4483_v59 = vpop.eup %4482  ;;  %4212 = vmatpush3.xpose.msk.msra.mxu0 %vm254_vm2, %v2378_v52  ;;  %4213 = vmatprep.mubr.msk.f32.mxu0 %vm4617_vm1, %v4616_v36 }
0x1521   :  { %v2222_v60 = vmul.f32 %v4483_v59, %v4479_v51  ;;  %4221 = vmatprep.subr.mxu0 %v4616_v36 }
0x1523   :  { %4209 = vmatmul.mubr.msk.f32.vlgmr.msra.gmra.mrb[28].mxu1 %vm254_vm2, %v2222_v60  ;;  %4214 = vmatmul.mubr.msk.f32.vlgmr.msra.gmra.mrb[20].mxu0 %vm254_vm2, %v2376_v62  ;;  %v5256_v60 = vld [vmem:[#allocation5] sm:$0xff] }
0x1524   :  { %4217 = vmatpush3.xpose.msk.msra.mxu1 %vm254_vm2, %v2456_v44  ;;  %4218 = vmatprep.mubr.msk.f32.mxu1 %vm4617_vm1, %v4616_v36 }
0x1525   :  { %4226 = vmatprep.subr.mxu1 %v4616_v36  ;;  %4223 = vmatprep.mubr.msk.f32.mxu0 %vm4617_vm1, %v4616_v36 }
0x1527   :  { %4219 = vmatmul.mubr.msk.f32.vlgmr.msra.gmra.mrb[30].mxu1 %vm254_vm2, %v2454_v37 }
0x1528   :  { %4228 = vmatprep.mubr.msk.f32.mxu1 %vm4617_vm1, %v4616_v36 }
0x15f2   :  { %v5212_v56 = vpop.f32.mrb[18].mxu0 }
0x15f3   :  { %v4205_v2 = vpop.f32.mrb[19].mxu0 }
0x15f6   :  { %v5214_v4 = vpop.f32.mrb[28].mxu1  ;;  %v2449_v5 = vpop.f32.mrb[20].mxu0 }
0x15f7   :  { %v2531_v7 = vmul.f32 0.35355338, %v2449_v5  ;;  %v4210_v8 = vpop.f32.mrb[29].mxu1  ;;  %v4215_v38 = vpop.f32.mrb[21].mxu0 }
0x15f9   :  { %v2533_v9 = vadd.f32 %v2531_v7, %v4845_v42 }
0x15fa   :  { %v2527_v11 = vpop.f32.mrb[30].mxu1 }
0x15fb   :  { %v2532_v12 = vmul.f32 0.35355338, %v2527_v11  ;;  %v4220_v14 = vpop.f32.mrb[31].mxu1  ;;  %v2535_v27 = vsel %vm254_vm2, %v2533_v9, -inf }
0x15fc   :  { %2536 = vmax.xlane.f32.xlu0 %v2535_v27 }
0x15fd   :  { %v2534_v29 = vadd.f32 %v2532_v12, %v4845_v42 }
0x15ff   :  { %v2538_v23 = vsel %vm254_vm2, %v2534_v29, -inf }
0x1600   :  { %2539 = vmax.xlane.f32.xlu1 %v2538_v23 }
0x1611   :  { %2633 = vrot.lane.b32.xlu1 %v5156_v18, %s4622_s27 }
0x1612   :  { %2557 = vrot.lane.b32.xlu0 %v5160_v22, %s4622_s27 }
0x1615   :  { %2711 = vrot.lane.b32.xlu1 %v5160_v22, %s4623_s28 }
0x1619   :  { %2789 = vrot.lane.b32.xlu1 %v5156_v18, %s4623_s28 }
0x161d   :  { %2787 = vrot.lane.b32.xlu1 %v5156_v18, %s4624_s15 }
0x1689   :  { %v2537_v24 = vpop.xlane.xlu0 %2536 }
0x168a   :  { %v2541_v42 = vsub.f32 %v2533_v9, %v2537_v24 }
0x168c   :  { %v2543_v25 = vmul.f32 1.442695, %v2541_v42 }
0x168d   :  { %v2558_v26 = vpop.permute.xlu0 %2557  ;;  %v2540_v28 = vpop.xlane.xlu1 %2539 }
0x168e   :  { %4484 = vpow2.f32 %v2543_v25  ;;  %v2542_v30 = vsub.f32 %v2534_v29, %v2540_v28  ;;  %4222 = vmatpush3.msra.mxu0 %v2558_v26 }
0x168f   :  { %4231 = vmatprep.subr.mxu0 %v4616_v36 }
0x1690   :  { %v2545_v31 = vmul.f32 1.442695, %v2542_v30 }
0x1691   :  { %v2634_v19 = vpop.permute.xlu1 %2633 }
0x1692   :  { %4486 = vpow2.f32 %v2545_v31  ;;  %4227 = vmatpush3.msra.mxu1 %v2634_v19 }
0x1693   :  { %4236 = vmatprep.subr.mxu1 %v4616_v36 }
0x1695   :  { %v2712_v45 = vpop.permute.xlu1 %2711 }
0x1698   :  { %v4485_v33 = vpop.eup %4484 }
0x1699   :  { %v2547_v34 = vsel %vm254_vm2, %v4485_v33, 0.0  ;;  %v2790_v0 = vpop.permute.xlu1 %2789 }
0x169a   :  { %2548 = vadd.xlane.f32.xlu0 %v2547_v34 }
0x169c   :  { %v4487_v35 = vpop.eup %4486 }
0x169d   :  { %v2550_v39 = vsel %vm254_vm2, %v4487_v35, 0.0  ;;  %v2788_v21 = vpop.permute.xlu1 %2787 }
0x169e   :  { %2551 = vadd.xlane.f32.xlu0 %v2550_v39 }
0x16b4   :  { %2709 = vrot.lane.b32.xlu0 %v5160_v22, %s4624_s15 }
0x1727   :  { %v2549_v40 = vpop.xlane.xlu0 %2548 }
0x1728   :  { %4488 = vrcp.f32 %v2549_v40 }
0x172b   :  { %v2552_v43 = vpop.xlane.xlu0 %2551 }
0x172c   :  { %4490 = vrcp.f32 %v2552_v43 }
0x172f   :  { %v2710_v51 = vpop.permute.xlu0 %2709 }
0x1732   :  { %v4489_v46 = vpop.eup %4488 }
0x1733   :  { %v2555_v47 = vmul.f32 %v4489_v46, %v4485_v33 }
0x1735   :  { %4224 = vmatmul.mubr.msk.f32.vlgmr.msra.gmra.mrb[22].mxu0 %vm254_vm2, %v2555_v47 }
0x1736   :  { %v4491_v49 = vpop.eup %4490  ;;  %4232 = vmatpush3.xpose.msk.msra.mxu0 %vm254_vm2, %v2712_v45  ;;  %4233 = vmatprep.mubr.msk.f32.mxu0 %vm4617_vm1, %v4616_v36 }
0x1737   :  { %v2556_v50 = vmul.f32 %v4491_v49, %v4487_v35  ;;  %4241 = vmatprep.subr.mxu0 %v4616_v36 }
0x1739   :  { %4229 = vmatmul.mubr.msk.f32.vlgmr.msra.gmra.mrb[32].mxu1 %vm254_vm2, %v2556_v50  ;;  %4234 = vmatmul.mubr.msk.f32.vlgmr.msra.gmra.mrb[24].mxu0 %vm254_vm2, %v2710_v51 }
0x173a   :  { %4237 = vmatpush3.xpose.msk.msra.mxu1 %vm254_vm2, %v2790_v0  ;;  %4238 = vmatprep.mubr.msk.f32.mxu1 %vm4617_vm1, %v4616_v36 }
0x173b   :  { %4246 = vmatprep.subr.mxu1 %v4616_v36  ;;  %4243 = vmatprep.mubr.msk.f32.mxu0 %vm4617_vm1, %v4616_v36 }
0x173d   :  { %4239 = vmatmul.mubr.msk.f32.vlgmr.msra.gmra.mrb[34].mxu1 %vm254_vm2, %v2788_v21 }
0x173e   :  { %4248 = vmatprep.mubr.msk.f32.mxu1 %vm4617_vm1, %v4616_v36 }
0x1808   :  { %v5252_v52 = vpop.f32.mrb[22].mxu0 }
0x1809   :  { %v4225_v44 = vpop.f32.mrb[23].mxu0 }
0x180c   :  { %v5254_v53 = vpop.f32.mrb[32].mxu1  ;;  %v2783_v54 = vpop.f32.mrb[24].mxu0 }
0x180d   :  { %v2865_v55 = vmul.f32 0.35355338, %v2783_v54  ;;  %v4230_v57 = vpop.f32.mrb[33].mxu1  ;;  %v4235_v59 = vpop.f32.mrb[25].mxu0 }
0x180f   :  { %v2867_v62 = vadd.f32 %v5256_v60, %v2865_v55 }
0x1810   :  { %v2861_v37 = vpop.f32.mrb[34].mxu1 }
0x1811   :  { %v2866_v2 = vmul.f32 0.35355338, %v2861_v37  ;;  %v4240_v5 = vpop.f32.mrb[35].mxu1  ;;  %v2869_v7 = vsel %vm254_vm2, %v2867_v62, -inf }
0x1812   :  { %2870 = vmax.xlane.f32.xlu0 %v2869_v7 }
0x1813   :  { %v2868_v8 = vadd.f32 %v5256_v60, %v2866_v2 }
0x1815   :  { %v2872_v38 = vsel %vm254_vm2, %v2868_v8, -inf }
0x1816   :  { %2873 = vmax.xlane.f32.xlu1 %v2872_v38 }
0x1827   :  { %2967 = vrot.lane.b32.xlu1 %v5156_v18, %s4625_s17 }
0x1828   :  { %2891 = vrot.lane.b32.xlu0 %v5160_v22, %s4625_s17 }
0x182b   :  { %3045 = vrot.lane.b32.xlu1 %v5160_v22, %s4626_s21 }
0x182f   :  { %3123 = vrot.lane.b32.xlu1 %v5156_v18, %s4626_s21 }
0x1833   :  { %3121 = vrot.lane.b32.xlu1 %v5156_v18, %s4627_s22 }
0x189f   :  { %v2871_v9 = vpop.xlane.xlu0 %2870 }
0x18a0   :  { %v2875_v11 = vsub.f32 %v2867_v62, %v2871_v9 }
0x18a2   :  { %v2877_v12 = vmul.f32 1.442695, %v2875_v11 }
0x18a3   :  { %v2892_v14 = vpop.permute.xlu0 %2891  ;;  %v2874_v27 = vpop.xlane.xlu1 %2873 }
0x18a4   :  { %4492 = vpow2.f32 %v2877_v12  ;;  %v2876_v29 = vsub.f32 %v2868_v8, %v2874_v27  ;;  %4242 = vmatpush3.msra.mxu0 %v2892_v14 }
0x18a5   :  { %4251 = vmatprep.subr.mxu0 %v4616_v36 }
0x18a6   :  { %v2879_v23 = vmul.f32 1.442695, %v2876_v29 }
0x18a7   :  { %v2968_v24 = vpop.permute.xlu1 %2967 }
0x18a8   :  { %4494 = vpow2.f32 %v2879_v23  ;;  %4247 = vmatpush3.msra.mxu1 %v2968_v24 }
0x18a9   :  { %4256 = vmatprep.subr.mxu1 %v4616_v36 }
0x18ab   :  { %v3046_v19 = vpop.permute.xlu1 %3045 }
0x18ae   :  { %v4493_v42 = vpop.eup %4492 }
0x18af   :  { %v2881_v25 = vsel %vm254_vm2, %v4493_v42, 0.0  ;;  %v3124_v39 = vpop.permute.xlu1 %3123 }
0x18b0   :  { %2882 = vadd.xlane.f32.xlu0 %v2881_v25 }
0x18b2   :  { %v4495_v26 = vpop.eup %4494 }
0x18b3   :  { %v2884_v28 = vsel %vm254_vm2, %v4495_v26, 0.0  ;;  %v3122_v45 = vpop.permute.xlu1 %3121 }
0x18b4   :  { %2885 = vadd.xlane.f32.xlu0 %v2884_v28 }
0x18ca   :  { %3043 = vrot.lane.b32.xlu0 %v5160_v22, %s4627_s22 }
0x193d   :  { %v2883_v30 = vpop.xlane.xlu0 %2882 }
0x193e   :  { %4496 = vrcp.f32 %v2883_v30 }
0x1941   :  { %v2886_v31 = vpop.xlane.xlu0 %2885 }
0x1942   :  { %4498 = vrcp.f32 %v2886_v31 }
0x1945   :  { %v3044_v43 = vpop.permute.xlu0 %3043 }
0x1948   :  { %v4497_v33 = vpop.eup %4496 }
0x1949   :  { %v2889_v34 = vmul.f32 %v4497_v33, %v4493_v42 }
0x194b   :  { %4244 = vmatmul.mubr.msk.f32.vlgmr.msra.gmra.mrb[26].mxu0 %vm254_vm2, %v2889_v34 }
0x194c   :  { %v4499_v35 = vpop.eup %4498  ;;  %4252 = vmatpush3.xpose.msk.msra.mxu0 %vm254_vm2, %v3046_v19  ;;  %4253 = vmatprep.mubr.msk.f32.mxu0 %vm4617_vm1, %v4616_v36 }
0x194d   :  { %v2890_v40 = vmul.f32 %v4499_v35, %v4495_v26  ;;  %4261 = vmatprep.subr.mxu0 %v4616_v36 }
0x194f   :  { %4249 = vmatmul.mubr.msk.f32.vlgmr.msra.gmra.mrb[36].mxu1 %vm254_vm2, %v2890_v40  ;;  %4254 = vmatmul.mubr.msk.f32.vlgmr.msra.gmra.mrb[28].mxu0 %vm254_vm2, %v3044_v43 }
0x1950   :  { %4257 = vmatpush3.xpose.msk.msra.mxu1 %vm254_vm2, %v3124_v39  ;;  %4258 = vmatprep.mubr.msk.f32.mxu1 %vm4617_vm1, %v4616_v36 }
0x1951   :  { %4266 = vmatprep.subr.mxu1 %v4616_v36  ;;  %4263 = vmatprep.mubr.msk.f32.mxu0 %vm4617_vm1, %v4616_v36 }
0x1953   :  { %4259 = vmatmul.mubr.msk.f32.vlgmr.msra.gmra.mrb[38].mxu1 %vm254_vm2, %v3122_v45 }
0x1954   :  { %4268 = vmatprep.mubr.msk.f32.mxu1 %vm4617_vm1, %v4616_v36 }
0x1a1e   :  { %v2963_v46 = vpop.f32.mrb[26].mxu0 }
0x1a1f   :  { %v4245_v47 = vpop.f32.mrb[27].mxu0 }
0x1a22   :  { %v3039_v49 = vpop.f32.mrb[36].mxu1  ;;  %v3117_v0 = vpop.f32.mrb[28].mxu0 }
0x1a23   :  { %v3199_v50 = vmul.f32 0.35355338, %v3117_v0  ;;  %v4250_v51 = vpop.f32.mrb[37].mxu1  ;;  %v4255_v21 = vpop.f32.mrb[29].mxu0 }
0x1a25   :  { %v3201_v44 = vadd.f32 %v5256_v60, %v3199_v50 }
0x1a26   :  { %v3195_v54 = vpop.f32.mrb[38].mxu1 }
0x1a27   :  { %v3200_v55 = vmul.f32 0.35355338, %v3195_v54  ;;  %v4260_v57 = vpop.f32.mrb[39].mxu1  ;;  %v3203_v59 = vsel %vm254_vm2, %v3201_v44, -inf }
0x1a28   :  { %3204 = vmax.xlane.f32.xlu0 %v3203_v59 }
0x1a29   :  { %v3202_v62 = vadd.f32 %v5256_v60, %v3200_v55 }
0x1a2b   :  { %v3206_v37 = vsel %vm254_vm2, %v3202_v62, -inf }
0x1a2c   :  { %3207 = vmax.xlane.f32.xlu1 %v3206_v37 }
0x1a3d   :  { %3301 = vrot.lane.b32.xlu1 %v5156_v18, %s4628_s23 }
0x1a41   :  { %3379 = vrot.lane.b32.xlu1 %v5252_v52, %s4614_s0 }
0x1a45   :  { %3381 = vrot.lane.b32.xlu1 %v5254_v53, %s4614_s0 }
0x1a49   :  { %3389 = vrot.lane.b32.xlu1 %v3039_v49, %s5421_s10 }
0x1ab5   :  { %v3205_v36 = vpop.xlane.xlu0 %3204 }
0x1ab6   :  { %v3209_v2 = vsub.f32 %v3201_v44, %v3205_v36 }
0x1ab8   :  { %v3211_v5 = vmul.f32 1.442695, %v3209_v2 }
0x1ab9   :  { %v3208_v7 = vpop.xlane.xlu1 %3207 }
0x1aba   :  { %4500 = vpow2.f32 %v3211_v5  ;;  %v3210_v60 = vsub.f32 %v3202_v62, %v3208_v7 }
0x1abc   :  { %v3213_v8 = vmul.f32 1.442695, %v3210_v60 }
0x1abd   :  { %v3302_v38 = vpop.permute.xlu1 %3301 }
0x1abe   :  { %4502 = vpow2.f32 %v3213_v8  ;;  %4267 = vmatpush3.msra.mxu1 %v3302_v38 }
0x1abf   :  { %4380 = vmatprep.subr.bf16.mxu1 %v5040_v58 }
0x1ac1   :  { %v3380_v26 = vpop.permute.xlu1 %3379 }
0x1ac4   :  { %v4501_v18 = vpop.eup %4500 }
0x1ac5   :  { %v3215_v52 = vsel %vm254_vm2, %v4501_v18, 0.0  ;;  %v3382_v28 = vpop.permute.xlu1 %3381 }
0x1ac6   :  { %3216 = vadd.xlane.f32.xlu0 %v3215_v52  ;;  %v3402_v33 = vsel %vm254_vm2, %v5214_v4, %v3382_v28 }
0x1ac8   :  { %v4503_v9 = vpop.eup %4502 }
0x1ac9   :  { %v3218_v53 = vsel %vm254_vm2, %v4503_v9, 0.0 }
0x1aca   :  { %3219 = vadd.xlane.f32.xlu0 %v3218_v53 }
0x1ae0   :  { %3225 = vrot.lane.b32.xlu0 %v5160_v22, %s4628_s23 }
0x1ae4   :  { %3387 = vrot.lane.b32.xlu0 %v2963_v46, %s5421_s10 }
0x1b53   :  { %v3217_v11 = vpop.xlane.xlu0 %3216 }
0x1b54   :  { %4504 = vrcp.f32 %v3217_v11 }
0x1b57   :  { %v3220_v12 = vpop.xlane.xlu0 %3219 }
0x1b58   :  { %4506 = vrcp.f32 %v3220_v12 }
0x1b5b   :  { %v3226_v14 = vpop.permute.xlu0 %3225 }
0x1b5c   :  { %4262 = vmatpush3.msra.mxu0 %v3226_v14 }
0x1b5d   :  { %4372 = vmatprep.subr.bf16.mxu0 %v4987_v10 }
0x1b5e   :  { %v4505_v27 = vpop.eup %4504 }
0x1b5f   :  { %v3223_v29 = vmul.f32 %v4505_v27, %v4501_v18  ;;  %v3388_v30 = vpop.permute.xlu0 %3387 }
0x1b61   :  { %4264 = vmatmul.mubr.msk.f32.vlgmr.msra.gmra.mrb[30].mxu0 %vm254_vm2, %v3223_v29 }
0x1b62   :  { %v4507_v23 = vpop.eup %4506  ;;  %4374 = vmatpush3.bf16.msra.mxu0 %v4987_v10 }
0x1b63   :  { %v3224_v24 = vmul.f32 %v4507_v23, %v4503_v9  ;;  %4376 = vmatprep.subr.bf16.mxu0 %v4996_v13 }
0x1b65   :  { %4269 = vmatmul.mubr.msk.f32.vlgmr.msra.gmra.mrb[40].mxu1 %vm254_vm2, %v3224_v24 }
0x1b66   :  { %4378 = vmatpush3.bf16.msra.mxu0 %v4996_v13  ;;  %4382 = vmatpush3.bf16.msra.mxu1 %v5040_v58  ;;  %v3401_v13 = vsel %vm254_vm2, %v5212_v56, %v3380_v26  ;;  %v3390_v58 = vpop.permute.xlu1 %3389 }
0x1b67   :  { %4384 = vmatprep.subr.bf16.mxu1 %v5050_v61  ;;  %4388 = vmatprep.subr.bf16.mxu0 %v5064_v63  ;;  %v3403_v31 = vsel %vm1612_vm4, %v3401_v13, %v3388_v30  ;;  %v3404_v34 = vsel %vm1612_vm4, %v3402_v33, %v3390_v58  ;;  %v3737_v33 = vld [vmem:[#allocation7 + $0x18] sm:$0xff] }
0x1b6a   :  { %4386 = vmatpush3.bf16.msra.mxu1 %v5050_v61 }
0x1c34   :  { %v3297_v22 = vpop.f32.mrb[30].mxu0 }
0x1c35   :  { %3395 = vrot.lane.b32.xlu0 %v3297_v22, %s4630_s26  ;;  %v4265_v42 = vpop.f32.mrb[31].mxu0 }
0x1c38   :  { %v3373_v10 = vpop.f32.mrb[40].mxu1 }
0x1c39   :  { %3397 = vrot.lane.b32.xlu1 %v3373_v10, %s4630_s26  ;;  %v4270_v25 = vpop.f32.mrb[41].mxu1 }
0x1ca7   :  { %v3396_v19 = vpop.permute.xlu0 %3395 }
0x1ca8   :  { %v3405_v61 = vsel %vm1615_vm3, %v3403_v31, %v3396_v19  ;;  %v3735_v31 = vld [vmem:[#allocation7 + $0x8] sm:$0xff] }
0x1ca9   :  { %4279 = vmatprep.mubr.msk.f32.mxu0 %vm126_vm0, %v3405_v61  ;;  %v3736_v61 = vld [vmem:[#allocation7 + $0x10] sm:$0xff] }
0x1cab   :  { %v3398_v35 = vpop.permute.xlu1 %3397 }
0x1cac   :  { %v3406_v39 = vsel %vm1615_vm3, %v3404_v34, %v3398_v35  ;;  %v4407_v34 = vpack.c.bf16 %v3737_v33, %v3736_v61 }
0x1cad   :  { %4280 = vmatmul.mubr.msk.f32.vlgmr.msra.gmra.mrb[32].mxu0 %vm126_vm0, %v3406_v39 }
0x1cae   :  { %4390 = vmatpush3.bf16.msra.mxu0 %v5064_v63 }
0x1caf   :  { %4392 = vmatprep.subr.bf16.mxu0 %v5069_v3 }
0x1cb2   :  { %4394 = vmatpush3.bf16.msra.mxu0 %v5069_v3 }
0x1cb3   :  { %4396 = vmatprep.subr.bf16.mxu0 %v5080_v6 }
0x1cb6   :  { %4398 = vmatpush3.bf16.msra.mxu0 %v5080_v6 }
0x1cb7   :  { %4400 = vmatprep.subr.bf16.mxu0 %v5111_v32 }
0x1cba   :  { %4402 = vmatpush3.bf16.msra.mxu0 %v5111_v32 }
0x1d80   :  { %v4281_v56 = vpop.f32.mrb[32].mxu0 }
0x1d81   :  { %v3489_v4 = vadd.f32 %v4281_v56, %v5135_v48  ;;  %v3479_v40 = vpop.f32.mrb[33].mxu0 }
0x1d82   :  { %v3488_v43 = vadd.f32 %v3479_v40, %v5138_v1 }
0x1d83   :  { %v3491_v63 = vadd.f32 %v5016_v16, %v3489_v4 }
0x1d84   :  { %v3490_v45 = vadd.f32 %v5016_v16, %v3488_v43 }
0x1d85   :  { %v3495_v3 = vsel %vm126_vm0, %v3491_v63, 0.0 }
0x1d86   :  { %3496 = vadd.xlane.f32.xlu1 %v3495_v3  ;;  %v3492_v46 = vsel %vm126_vm0, %v3490_v45, 0.0 }
0x1d87   :  { %3493 = vadd.xlane.f32.xlu0 %v3492_v46 }
0x1e13   :  { %v3497_v6 = vpop.xlane.xlu1 %3496 }
0x1e14   :  { %v3499_v47 = vmul.f32 0.03125, %v3497_v6  ;;  %v3494_v49 = vpop.xlane.xlu0 %3493 }
0x1e15   :  { %v3498_v32 = vmul.f32 0.03125, %v3494_v49 }
0x1e16   :  { %v3501_v0 = vsub.f32 %v3491_v63, %v3499_v47  ;;  %v3918_v47 = vld [vmem:[%s5406_s14] ss:$0 sm:$0xff] }
0x1e17   :  { %v3500_v50 = vsub.f32 %v3490_v45, %v3498_v32 }
0x1e18   :  { %v3503_v1 = vmul.f32 %v3501_v0, %v3501_v0 }
0x1e19   :  { %v3502_v48 = vmul.f32 %v3500_v50, %v3500_v50 }
0x1e1a   :  { %v3507_v21 = vsel %vm126_vm0, %v3503_v1, 0.0 }
0x1e1b   :  { %v3504_v51 = vsel %vm126_vm0, %v3502_v48, 0.0  ;;  %v3919_v48 = vld [vmem:[%s5408_s16] ss:$0 sm:$0xff] }
0x1e1c   :  { %3505 = vadd.xlane.f32.xlu0 %v3504_v51 }
0x1e20   :  { %3508 = vadd.xlane.f32.xlu0 %v3507_v21 }
0x1ea9   :  { %v3506_v16 = vpop.xlane.xlu0 %3505 }
0x1eaa   :  { %v3510_v44 = vmul.f32 0.03125, %v3506_v16 }
0x1eac   :  { %v3512_v54 = vadd.f32 1e-05, %v3510_v44 }
0x1ead   :  { %v3509_v55 = vpop.xlane.xlu0 %3508 }
0x1eae   :  { %4508 = vrsqrt.f32 %v3512_v54  ;;  %v3511_v57 = vmul.f32 0.03125, %v3509_v55 }
0x1eb0   :  { %v3513_v59 = vadd.f32 1e-05, %v3511_v57 }
0x1eb2   :  { %4510 = vrsqrt.f32 %v3513_v59 }
0x1eb8   :  { %v4509_v62 = vpop.eup %4508 }
0x1eb9   :  { %v3516_v37 = vmul.f32 %v4509_v62, %v3500_v50 }
0x1ebb   :  { %v3518_v36 = vmul.f32 %v5088_v15, %v3516_v37 }
0x1ebc   :  { %v4511_v2 = vpop.eup %4510 }
0x1ebd   :  { %v3517_v5 = vmul.f32 %v4511_v2, %v3501_v0  ;;  %v3520_v7 = vadd.f32 %v5093_v20, %v3518_v36 }
0x1ebf   :  { %4290 = vmatprep.mubr.msk.f32.mxu1 %vm126_vm0, %v3520_v7  ;;  %v3519_v60 = vmul.f32 %v5088_v15, %v3517_v5 }
0x1ec1   :  { %v3521_v8 = vadd.f32 %v5093_v20, %v3519_v60 }
0x1ec3   :  { %4291 = vmatmul.mubr.msk.f32.vlgmr.msra.gmra.mrb[42].mxu1 %vm126_vm0, %v3521_v8 }
0x1f96   :  { %v4292_v38 = vpop.f32.mrb[42].mxu1 }
0x1f97   :  { %v3600_v18 = vadd.f32 %v4292_v38, %v5119_v17  ;;  %v3594_v52 = vpop.f32.mrb[43].mxu1 }
0x1f98   :  { %v3595_v9 = vadd.f32 %v5119_v17, %v3594_v52 }
0x1f99   :  { %v3604_v11 = vmax.f32 %v3600_v18, 0.0 }
0x1f9a   :  { %v3603_v53 = vmax.f32 %v3595_v9, 0.0 }
0x1f9c   :  { %4309 = vmatprep.mubr.msk.f32.mxu0 %vm1840_vm5, %v3603_v53 }
0x1f9d   :  { %4310 = vmatmul.mubr.msk.f32.vlgmr.msra.gmra.mrb[34].mxu0 %vm1840_vm5, %v3604_v11 }
0x2070   :  { %v4311_v12 = vpop.f32.mrb[34].mxu0 }
0x2071   :  { %v3687_v14 = vadd.f32 %v4311_v12, %v3491_v63  ;;  %v3677_v27 = vpop.f32.mrb[35].mxu0 }
0x2072   :  { %v3686_v15 = vadd.f32 %v3677_v27, %v3490_v45  ;;  %v3917_v45 = vld [vmem:[%s5405_s13] ss:$0 sm:$0xff]  ;;  %s4631_s13 = smov [#allocation8]  }
0x2073   :  { %v3689_v20 = vadd.f32 %v5130_v41, %v3687_v14  ;;  %s3833_s28 = sshll.u32 %s4631_s13, 4  ;;  %s3834_s28 = int_to_ptr.vmem [resolvable:$true] %s3833_s28 }
0x2074   :  { %v3688_v29 = vadd.f32 %v5130_v41, %v3686_v15  ;;  %v3734_v41 = vld [vmem:[#allocation7] sm:$0xff]  ;;  %s4583_s14 = scalar_lea.vmem %s3834_s28, 256  ;;  %p4588_p11 = scmp.lt.s32.totalorder %s3834_s28, %s3834_s28 }
0x2075   :  { %v3695_v23 = vsel %vm126_vm0, %v3689_v20, 0.0  ;;  %v4403_v19 = vpack.c.bf16 %v3735_v31, %v3734_v41  ;;  %p4584_p10 = scmp.ne.s32.totalorder %s3834_s28, %s4583_s14  ;;  %p4589_p12 = scmp.lt.s32.totalorder %s4583_s14, %s4583_s14 }
0x2076   :  { %3696 = vadd.xlane.f32.xlu1 %v3695_v23  ;;  %v3692_v24 = vsel %vm126_vm0, %v3688_v29, 0.0 }
0x2077   :  { %3693 = vadd.xlane.f32.xlu0 %v3692_v24  ;;  %4404 = vmatprep.subr.bf16.mxu1 %v4403_v19  ;;  %p4590_p13 = por %p4589_p12, %p4588_p11 }
0x2078   :  { %4406 = vmatpush3.bf16.msra.mxu1 %v4403_v19 }
0x2079   :  { %4408 = vmatprep.subr.bf16.mxu1 %v4407_v34  ;;  %p4591_p0 = pnand %p4590_p13, %p4584_p10 }
0x207c   :  { %4410 = vmatpush3.bf16.msra.mxu1 %v4407_v34 }
0x2103   :  { %v3697_v17 = vpop.xlane.xlu1 %3696 }
0x2104   :  { %v3699_v22 = vmul.f32 0.03125, %v3697_v17  ;;  %v3694_v42 = vpop.xlane.xlu0 %3693 }
0x2105   :  { %v3698_v10 = vmul.f32 0.03125, %v3694_v42 }
0x2106   :  { %v3701_v25 = vsub.f32 %v3689_v20, %v3699_v22 }
0x2107   :  { %v3700_v26 = vsub.f32 %v3688_v29, %v3698_v10 }
0x2108   :  { %v3703_v28 = vmul.f32 %v3701_v25, %v3701_v25 }
0x2109   :  { %v3702_v30 = vmul.f32 %v3700_v26, %v3700_v26 }
0x210a   :  { %v3707_v13 = vsel %vm126_vm0, %v3703_v28, 0.0 }
0x210b   :  { %3708 = vadd.xlane.f32.xlu1 %v3707_v13  ;;  %v3704_v58 = vsel %vm126_vm0, %v3702_v30, 0.0 }
0x210c   :  { %3705 = vadd.xlane.f32.xlu0 %v3704_v58 }
0x2198   :  { %v3709_v35 = vpop.xlane.xlu1 %3708 }
0x2199   :  { %v3711_v39 = vmul.f32 0.03125, %v3709_v35  ;;  %v3706_v56 = vpop.xlane.xlu0 %3705 }
0x219a   :  { %v3710_v4 = vmul.f32 0.03125, %v3706_v56 }
0x219b   :  { %v3713_v40 = vadd.f32 1e-05, %v3711_v39 }
0x219c   :  { %v3712_v43 = vadd.f32 1e-05, %v3710_v4 }
0x219d   :  { %4512 = vrsqrt.f32 %v3713_v40 }
0x219e   :  { %4514 = vrsqrt.f32 %v3712_v43 }
0x21a7   :  { %v4513_v63 = vpop.eup %4512 }
0x21a8   :  { %v4515_v3 = vpop.eup %4514  ;;  %v3717_v46 = vmul.f32 %v4513_v63, %v3701_v25 }
0x21a9   :  { %v3716_v6 = vmul.f32 %v4515_v3, %v3700_v26 }
0x21aa   :  { %v3725_v49 = vmul.f32 %v3917_v45, %v3717_v46 }
0x21ab   :  { %v3724_v32 = vmul.f32 %v3917_v45, %v3716_v6 }
0x21ac   :  { %v3733_v50 = vadd.f32 %v3918_v47, %v3725_v49 }
0x21ad   :  { %v3732_v0 = vadd.f32 %v3918_v47, %v3724_v32 }
0x21af   :  { %4320 = vmatprep.mubr.msk.f32.mxu1 %vm126_vm0, %v3732_v0 }
0x21b0   :  { %4321 = vmatmul.mubr.msk.f32.vlgmr.msra.gmra.mrb[44].mxu1 %vm126_vm0, %v3733_v50 }
0x2283   :  { %v4322_v51 = vpop.f32.mrb[44].mxu1 }
0x2284   :  { %v3823_v1 = vadd.f32 %v4322_v51, %v3919_v48  ;;  %v3817_v21 = vpop.f32.mrb[45].mxu1 }
0x2285   :  { %v3818_v16 = vadd.f32 %v3919_v48, %v3817_v21 }
0x2286   :  { %3827 = vst.msk [vmem:[#allocation8 + $0x8] sm:$0xff] %vm126_vm0, %v3823_v1 }
0x2287   :  { %3826 = vst.msk [vmem:[#allocation8] sm:$0xff] %vm126_vm0, %v3818_v16 }
0x2288   :  { %4594 = shalt.err (!%p4591_p0)
}
0x2289   :  { %s5422_s17 = sld [smem:[#allocation14_spill]] }
0x228f   :  { %s4595_s21 = scalar_lea.hbm %s5422_s17, 256 }
0x2290   :  { %p4596_p1 = scmp.ne.s32.totalorder %s5422_s17, %s4595_s21  ;;  %p4599_p2 = scmp.lt.u32.totalorder %s4595_s21, %s5422_s17 }
0x2292   :  { %p4601_p3 = pnand %p4599_p2, %p4596_p1 }
0x2294   :  { %4604 = shalt.err (!%p4601_p3)
}
0x2295   :  { %s5423_s24 = smov 128  }
0x2296   :  { %3839 = dma.vmem_to_hbm [thread:$0]  %s3834_s28, 256, %s5422_s17, [#allocation4], %s5423_s24, %s5423_s24, %s4614_s0  }
0x2297   :  { %4609 = dma.done.wait [#allocation4], 256  }
0x2298   :  { %4610 = vsyncadd [#allocation4], 4294967040 }
0x2299   :  { %3843 = vsyncpa [#allocation3], 1 }
0x229a   :  { %3844 = vsyncpa [#allocation6], 1 }
0x229b   :  { %3845 = vsyncpa [#allocation4], 1 }

</bundles_post_ra>
